<compile_context>
chip_gen: v7x
topology: tpu7x:2x2x1
jax: 0.10.0
libtpu: 0.0.40
codegen_flags: <defaults>
</compile_context>

<pallas_src>
import functools

import jax
import jax.numpy as jnp
from jax.experimental import pallas as pl
from jax.experimental.pallas import tpu as pltpu


def _bilstm_tagger_kernel(
    emb_ref,     # (msl*bs, E)   f32   time-major flattened embeddings
    wx_ref,      # (E, 8H)       f32   [W_ih_f^T | W_ih_b^T]
    wh_ref,      # (2H, 8H)      f32   block_diag(W_hh_f^T, W_hh_b^T)
    b_ref,       # (1, 8H)       f32   [b_f | b_b], b = b_ih + b_hh
    wfc_ref,     # (2H, T)       f32   fc1 weight^T (un-split)
    bfc_ref,     # (1, T)        f32   fc1 bias
    out_ref,     # (msl*bs, T)   f32
    gx_ref,      # (msl*bs, 8H)  f32   scratch: precomputed x-gates
    hseq_ref,    # (msl*bs, 2H)  f32   scratch: [h_fwd | h_bwd] per (t, b)
    *, msl, bs, hidden,
):
    H = hidden
    H4 = 4 * H

    # ---- 1) input projection for both directions, one big matmul + fused bias.
    gx_ref[...] = (
        jnp.dot(emb_ref[...], wx_ref[...], preferred_element_type=jnp.float32)
        + b_ref[...])

    # ---- 2) merged fwd/bwd recurrence, fully unrolled (msl static & small).
    wh = wh_ref[...]                                   # hoisted load, (2H, 8H)
    zeros = jnp.zeros((bs, H), jnp.float32)            # matches init_hidden()
    h_f, c_f, h_b, c_b = zeros, zeros, zeros, zeros

    for s in range(msl):
        t_f = s
        t_b = msl - 1 - s

        # one recurrent MXU push for both directions
        h_cat = jnp.concatenate([h_f, h_b], axis=1)                     # (bs, 2H)
        gh = jnp.dot(h_cat, wh, preferred_element_type=jnp.float32)     # (bs, 8H)

        # x-gates: fwd gates at time t_f, bwd gates at time t_b (128-lane slices)
        gx_f = gx_ref[t_f * bs:(t_f + 1) * bs, :H4]                     # (bs, 4H)
        gx_b = gx_ref[t_b * bs:(t_b + 1) * bs, H4:]                     # (bs, 4H)
        gates_f = gh[:, :H4] + gx_f
        gates_b = gh[:, H4:] + gx_b

        # full-vreg activations, then static H-wide slices (PyTorch order i,f,g,o)
        sig_f = jax.nn.sigmoid(gates_f)
        tah_f = jnp.tanh(gates_f)
        sig_b = jax.nn.sigmoid(gates_b)
        tah_b = jnp.tanh(gates_b)

        c_f = sig_f[:, H:2 * H] * c_f + sig_f[:, :H] * tah_f[:, 2 * H:3 * H]
        h_f = sig_f[:, 3 * H:] * jnp.tanh(c_f)
        c_b = sig_b[:, H:2 * H] * c_b + sig_b[:, :H] * tah_b[:, 2 * H:3 * H]
        h_b = sig_b[:, 3 * H:] * jnp.tanh(c_b)

        hseq_ref[t_f * bs:(t_f + 1) * bs, :H] = h_f
        hseq_ref[t_b * bs:(t_b + 1) * bs, H:] = h_b

    # ---- 3) fc1 on concat([h_fwd, h_bwd]) over the whole sequence:
    #         single matmul + single contiguous slab store.
    #         (nn.Dropout(p) is identity at inference.)
    out_ref[...] = (
        jnp.dot(hseq_ref[...], wfc_ref[...], preferred_element_type=jnp.float32)
        + bfc_ref[...]).astype(out_ref.dtype)


def init_params(key, word_vocab_sz, tag_vocab_sz, embedding_dim, hidden_dim):
    """Deterministic synthetic parameters (PyTorch-shaped)."""
    H, E, T = hidden_dim, embedding_dim, tag_vocab_sz
    ks = jax.random.split(key, 12)
    n = lambda k, shape: (0.1 * jax.random.normal(k, shape)).astype(jnp.float32)
    return {
        "embedding": n(ks[0], (word_vocab_sz, E)),
        # forward direction (PyTorch layout: (4H, in), gate order i,f,g,o)
        "w_ih_f": n(ks[1], (4 * H, E)),
        "w_hh_f": n(ks[2], (4 * H, H)),
        "b_ih_f": n(ks[3], (4 * H,)),
        "b_hh_f": n(ks[4], (4 * H,)),
        # backward direction
        "w_ih_b": n(ks[5], (4 * H, E)),
        "w_hh_b": n(ks[6], (4 * H, H)),
        "b_ih_b": n(ks[7], (4 * H,)),
        "b_hh_b": n(ks[8], (4 * H,)),
        # fc1: Linear(2H -> T), PyTorch layout (T, 2H)
        "w_fc": n(ks[9], (T, 2 * H)),
        "b_fc": n(ks[10], (T,)),
    }


def prepare_params(params):
    """One-time repacking of PyTorch-shaped params into kernel layout.

    Done once at init so transposes / bias fusion / block-diag construction are
    NOT on the per-call path.
    """
    H = params["w_hh_f"].shape[1]
    T = params["w_fc"].shape[0]
    # Stacked input-projection weights: cols [0:4H] fwd, [4H:8H] bwd.
    wx = jnp.concatenate([params["w_ih_f"].T, params["w_ih_b"].T], axis=1)
    b = jnp.concatenate([params["b_ih_f"] + params["b_hh_f"],
                         params["b_ih_b"] + params["b_hh_b"]]).reshape(1, 8 * H)
    # Block-diagonal recurrent weights: (h_f | h_b) @ wh -> (fwd 4H | bwd 4H).
    zH = jnp.zeros((H, 4 * H), jnp.float32)
    wh = jnp.concatenate([
        jnp.concatenate([params["w_hh_f"].T, zH], axis=1),
        jnp.concatenate([zH, params["w_hh_b"].T], axis=1)], axis=0)
    wfc = params["w_fc"].T                         # (2H, T)
    bfc = params["b_fc"].reshape(1, T)
    return {
        "embedding": params["embedding"],
        "wx": jnp.asarray(wx, jnp.float32),
        "wh": jnp.asarray(wh, jnp.float32),
        "b": jnp.asarray(b, jnp.float32),
        "wfc": jnp.asarray(wfc, jnp.float32),
        "bfc": jnp.asarray(bfc, jnp.float32),
    }


@jax.jit
def lstm_tagger_forward(x_ids, prepped):
    msl, bs = x_ids.shape
    H = prepped["wh"].shape[0] // 2
    T = prepped["wfc"].shape[1]

    # Embedding lookup (glue; gather has no clean rectangular BlockSpec form).
    # TODO(synk): nn.Embedding gather stays as plain-JAX jnp.take outside the kernel.
    emb = jnp.take(prepped["embedding"], x_ids.reshape(-1), axis=0)  # (msl*bs, E)

    vmem = pl.BlockSpec(memory_space=pltpu.MemorySpace.VMEM)
    out = pl.pallas_call(
        functools.partial(_bilstm_tagger_kernel, msl=msl, bs=bs, hidden=H),
        out_shape=jax.ShapeDtypeStruct((msl * bs, T), jnp.float32),
        in_specs=[vmem] * 6,
        out_specs=vmem,
        scratch_shapes=[
            pltpu.VMEM((msl * bs, 8 * H), jnp.float32),   # gx (x-gates, both dirs)
            pltpu.VMEM((msl * bs, 2 * H), jnp.float32),   # hseq [h_fwd | h_bwd]
        ],
    )(emb, prepped["wx"], prepped["wh"], prepped["b"],
      prepped["wfc"], prepped["bfc"])

    return out.reshape(msl, bs, T)


if __name__ == "__main__":
    WORD_VOCAB = 100
    TAG_VOCAB = 16
    EMBED_DIM = 32
    HIDDEN_DIM = 32
    MSL = 8     # sequence length
    BS = 4      # batch size

    key = jax.random.PRNGKey(0)
    pkey, xkey = jax.random.split(key)
    params = init_params(pkey, WORD_VOCAB, TAG_VOCAB, EMBED_DIM, HIDDEN_DIM)
    prepped = prepare_params(params)   # one-time repack (off the per-call path)
    x = jax.random.randint(xkey, (MSL, BS), 0, WORD_VOCAB, dtype=jnp.int32)

    out = lstm_tagger_forward(x, prepped)
    jax.block_until_ready(out)
    assert out.shape == (MSL, BS, TAG_VOCAB), out.shape
    print("KERNEL_OK")
</pallas_src>

<mosaic_0001>
module attributes {stable_mosaic.version = 11 : i64} {
  func.func @_bilstm_tagger_kernel(%arg0: memref<32x32xf32, #tpu.memory_space<vmem>>, %arg1: memref<32x256xf32, #tpu.memory_space<vmem>>, %arg2: memref<64x256xf32, #tpu.memory_space<vmem>>, %arg3: memref<1x256xf32, #tpu.memory_space<vmem>>, %arg4: memref<64x16xf32, #tpu.memory_space<vmem>>, %arg5: memref<1x16xf32, #tpu.memory_space<vmem>>, %arg6: memref<32x16xf32, #tpu.memory_space<vmem>>, %arg7: memref<32x256xf32, #tpu.memory_space<vmem>>, %arg8: memref<32x64xf32, #tpu.memory_space<vmem>>) attributes {dimension_semantics = [], scalar_prefetch = 0 : i64, scratch_operands = 2 : i64, tpu.core_type = #tpu.core_type<tc>} {
    %c0 = arith.constant 0 : index
    %c0_0 = arith.constant 0 : index
    %0 = vector.load %arg0[%c0, %c0_0] : memref<32x32xf32, #tpu.memory_space<vmem>>, vector<32x32xf32>
    %c0_1 = arith.constant 0 : index
    %c0_2 = arith.constant 0 : index
    %1 = vector.load %arg1[%c0_1, %c0_2] : memref<32x256xf32, #tpu.memory_space<vmem>>, vector<32x256xf32>
    %cst = arith.constant dense<0.000000e+00> : vector<32x256xf32>
    %2 = tpu.matmul %0, %1, %cst {dimension_numbers = #tpu.dot_dimension_numbers<[1], [0], [0], [1], [0, 0, 1, 1], [], []>} : vector<32x32xf32>, vector<32x256xf32>, vector<32x256xf32> -> vector<32x256xf32>
    %c0_3 = arith.constant 0 : index
    %c0_4 = arith.constant 0 : index
    %3 = vector.load %arg3[%c0_3, %c0_4] : memref<1x256xf32, #tpu.memory_space<vmem>>, vector<1x256xf32>
    %4 = vector.broadcast %3 : vector<1x256xf32> to vector<32x256xf32>
    %5 = arith.addf %2, %4 : vector<32x256xf32>
    %c0_5 = arith.constant 0 : index
    %c0_6 = arith.constant 0 : index
    %6 = vector.load %arg7[%c0_5, %c0_6] : memref<32x256xf32, #tpu.memory_space<vmem>>, vector<32x256xf32>
    tpu.vector_store %arg7[%c0_5, %c0_6], %5 {strides = array<i32>} : memref<32x256xf32, #tpu.memory_space<vmem>>, vector<32x256xf32>,
    %c0_7 = arith.constant 0 : index
    %c0_8 = arith.constant 0 : index
    %7 = vector.load %arg2[%c0_7, %c0_8] : memref<64x256xf32, #tpu.memory_space<vmem>>, vector<64x256xf32>
    %cst_9 = arith.constant 0.000000e+00 : f32
    %8 = vector.broadcast %cst_9 : f32 to vector<4x32xf32>
    %9 = tpu.concatenate %8, %8 in 1 : vector<4x32xf32>, vector<4x32xf32> -> vector<4x64xf32>
    %cst_10 = arith.constant dense<0.000000e+00> : vector<4x256xf32>
    %10 = tpu.matmul %9, %7, %cst_10 {dimension_numbers = #tpu.dot_dimension_numbers<[1], [0], [0], [1], [0, 0, 1, 1], [], []>} : vector<4x64xf32>, vector<64x256xf32>, vector<4x256xf32> -> vector<4x256xf32>
    %c0_11 = arith.constant 0 : index
    %c0_12 = arith.constant 0 : index
    %11 = vector.load %arg7[%c0_11, %c0_12] : memref<32x256xf32, #tpu.memory_space<vmem>>, vector<4x128xf32>
    %c28 = arith.constant 28 : index
    %c128 = arith.constant 128 : index
    %12 = vector.load %arg7[%c28, %c128] : memref<32x256xf32, #tpu.memory_space<vmem>>, vector<4x128xf32>
    %13 = vector.extract_strided_slice %10 {offsets = [0, 0], sizes = [4, 128], strides = [1, 1]} : vector<4x256xf32> to vector<4x128xf32>
    %14 = arith.addf %13, %11 : vector<4x128xf32>
    %15 = vector.extract_strided_slice %10 {offsets = [0, 128], sizes = [4, 128], strides = [1, 1]} : vector<4x256xf32> to vector<4x128xf32>
    %16 = arith.addf %15, %12 : vector<4x128xf32>
    %17 = arith.negf %14 : vector<4x128xf32>
    %18 = math.exp %17 : vector<4x128xf32>
    %cst_13 = arith.constant 1.000000e+00 : f32
    %19 = vector.broadcast %cst_13 : f32 to vector<4x128xf32>
    %20 = arith.addf %19, %18 : vector<4x128xf32>
    %21 = arith.divf %19, %20 : vector<4x128xf32>
    %22 = math.tanh %14 : vector<4x128xf32>
    %23 = arith.negf %16 : vector<4x128xf32>
    %24 = math.exp %23 : vector<4x128xf32>
    %cst_14 = arith.constant 1.000000e+00 : f32
    %25 = vector.broadcast %cst_14 : f32 to vector<4x128xf32>
    %26 = arith.addf %25, %24 : vector<4x128xf32>
    %27 = arith.divf %25, %26 : vector<4x128xf32>
    %28 = math.tanh %16 : vector<4x128xf32>
    %29 = vector.extract_strided_slice %21 {offsets = [0, 32], sizes = [4, 32], strides = [1, 1]} : vector<4x128xf32> to vector<4x32xf32>
    %30 = arith.mulf %29, %8 : vector<4x32xf32>
    %31 = vector.extract_strided_slice %21 {offsets = [0, 0], sizes = [4, 32], strides = [1, 1]} : vector<4x128xf32> to vector<4x32xf32>
    %32 = vector.extract_strided_slice %22 {offsets = [0, 64], sizes = [4, 32], strides = [1, 1]} : vector<4x128xf32> to vector<4x32xf32>
    %33 = arith.mulf %31, %32 : vector<4x32xf32>
    %34 = arith.addf %30, %33 : vector<4x32xf32>
    %35 = vector.extract_strided_slice %21 {offsets = [0, 96], sizes = [4, 32], strides = [1, 1]} : vector<4x128xf32> to vector<4x32xf32>
    %36 = math.tanh %34 : vector<4x32xf32>
    %37 = arith.mulf %35, %36 : vector<4x32xf32>
    %38 = vector.extract_strided_slice %27 {offsets = [0, 32], sizes = [4, 32], strides = [1, 1]} : vector<4x128xf32> to vector<4x32xf32>
    %39 = arith.mulf %38, %8 : vector<4x32xf32>
    %40 = vector.extract_strided_slice %27 {offsets = [0, 0], sizes = [4, 32], strides = [1, 1]} : vector<4x128xf32> to vector<4x32xf32>
    %41 = vector.extract_strided_slice %28 {offsets = [0, 64], sizes = [4, 32], strides = [1, 1]} : vector<4x128xf32> to vector<4x32xf32>
    %42 = arith.mulf %40, %41 : vector<4x32xf32>
    %43 = arith.addf %39, %42 : vector<4x32xf32>
    %44 = vector.extract_strided_slice %27 {offsets = [0, 96], sizes = [4, 32], strides = [1, 1]} : vector<4x128xf32> to vector<4x32xf32>
    %45 = math.tanh %43 : vector<4x32xf32>
    %46 = arith.mulf %44, %45 : vector<4x32xf32>
    %c0_15 = arith.constant 0 : index
    %c0_16 = arith.constant 0 : index
    %47 = vector.load %arg8[%c0_15, %c0_16] : memref<32x64xf32, #tpu.memory_space<vmem>>, vector<4x32xf32>
    tpu.vector_store %arg8[%c0_15, %c0_16], %37 {strides = array<i32>} : memref<32x64xf32, #tpu.memory_space<vmem>>, vector<4x32xf32>,
    %c28_17 = arith.constant 28 : index
    %c32 = arith.constant 32 : index
    %48 = vector.load %arg8[%c28_17, %c32] : memref<32x64xf32, #tpu.memory_space<vmem>>, vector<4x32xf32>
    tpu.vector_store %arg8[%c28_17, %c32], %46 {strides = array<i32>} : memref<32x64xf32, #tpu.memory_space<vmem>>, vector<4x32xf32>,
    %49 = tpu.concatenate %37, %46 in 1 : vector<4x32xf32>, vector<4x32xf32> -> vector<4x64xf32>
    %cst_18 = arith.constant dense<0.000000e+00> : vector<4x256xf32>
    %50 = tpu.matmul %49, %7, %cst_18 {dimension_numbers = #tpu.dot_dimension_numbers<[1], [0], [0], [1], [0, 0, 1, 1], [], []>} : vector<4x64xf32>, vector<64x256xf32>, vector<4x256xf32> -> vector<4x256xf32>
    %c4 = arith.constant 4 : index
    %c0_19 = arith.constant 0 : index
    %51 = vector.load %arg7[%c4, %c0_19] : memref<32x256xf32, #tpu.memory_space<vmem>>, vector<4x128xf32>
    %c24 = arith.constant 24 : index
    %c128_20 = arith.constant 128 : index
    %52 = vector.load %arg7[%c24, %c128_20] : memref<32x256xf32, #tpu.memory_space<vmem>>, vector<4x128xf32>
    %53 = vector.extract_strided_slice %50 {offsets = [0, 0], sizes = [4, 128], strides = [1, 1]} : vector<4x256xf32> to vector<4x128xf32>
    %54 = arith.addf %53, %51 : vector<4x128xf32>
    %55 = vector.extract_strided_slice %50 {offsets = [0, 128], sizes = [4, 128], strides = [1, 1]} : vector<4x256xf32> to vector<4x128xf32>
    %56 = arith.addf %55, %52 : vector<4x128xf32>
    %57 = arith.negf %54 : vector<4x128xf32>
    %58 = math.exp %57 : vector<4x128xf32>
    %cst_21 = arith.constant 1.000000e+00 : f32
    %59 = vector.broadcast %cst_21 : f32 to vector<4x128xf32>
    %60 = arith.addf %59, %58 : vector<4x128xf32>
    %61 = arith.divf %59, %60 : vector<4x128xf32>
    %62 = math.tanh %54 : vector<4x128xf32>
    %63 = arith.negf %56 : vector<4x128xf32>
    %64 = math.exp %63 : vector<4x128xf32>
    %cst_22 = arith.constant 1.000000e+00 : f32
    %65 = vector.broadcast %cst_22 : f32 to vector<4x128xf32>
    %66 = arith.addf %65, %64 : vector<4x128xf32>
    %67 = arith.divf %65, %66 : vector<4x128xf32>
    %68 = math.tanh %56 : vector<4x128xf32>
    %69 = vector.extract_strided_slice %61 {offsets = [0, 32], sizes = [4, 32], strides = [1, 1]} : vector<4x128xf32> to vector<4x32xf32>
    %70 = arith.mulf %69, %34 : vector<4x32xf32>
    %71 = vector.extract_strided_slice %61 {offsets = [0, 0], sizes = [4, 32], strides = [1, 1]} : vector<4x128xf32> to vector<4x32xf32>
    %72 = vector.extract_strided_slice %62 {offsets = [0, 64], sizes = [4, 32], strides = [1, 1]} : vector<4x128xf32> to vector<4x32xf32>
    %73 = arith.mulf %71, %72 : vector<4x32xf32>
    %74 = arith.addf %70, %73 : vector<4x32xf32>
    %75 = vector.extract_strided_slice %61 {offsets = [0, 96], sizes = [4, 32], strides = [1, 1]} : vector<4x128xf32> to vector<4x32xf32>
    %76 = math.tanh %74 : vector<4x32xf32>
    %77 = arith.mulf %75, %76 : vector<4x32xf32>
    %78 = vector.extract_strided_slice %67 {offsets = [0, 32], sizes = [4, 32], strides = [1, 1]} : vector<4x128xf32> to vector<4x32xf32>
    %79 = arith.mulf %78, %43 : vector<4x32xf32>
    %80 = vector.extract_strided_slice %67 {offsets = [0, 0], sizes = [4, 32], strides = [1, 1]} : vector<4x128xf32> to vector<4x32xf32>
    %81 = vector.extract_strided_slice %68 {offsets = [0, 64], sizes = [4, 32], strides = [1, 1]} : vector<4x128xf32> to vector<4x32xf32>
    %82 = arith.mulf %80, %81 : vector<4x32xf32>
    %83 = arith.addf %79, %82 : vector<4x32xf32>
    %84 = vector.extract_strided_slice %67 {offsets = [0, 96], sizes = [4, 32], strides = [1, 1]} : vector<4x128xf32> to vector<4x32xf32>
    %85 = math.tanh %83 : vector<4x32xf32>
    %86 = arith.mulf %84, %85 : vector<4x32xf32>
    %c4_23 = arith.constant 4 : index
    %c0_24 = arith.constant 0 : index
    %87 = vector.load %arg8[%c4_23, %c0_24] : memref<32x64xf32, #tpu.memory_space<vmem>>, vector<4x32xf32>
    tpu.vector_store %arg8[%c4_23, %c0_24], %77 {strides = array<i32>} : memref<32x64xf32, #tpu.memory_space<vmem>>, vector<4x32xf32>,
    %c24_25 = arith.constant 24 : index
    %c32_26 = arith.constant 32 : index
    %88 = vector.load %arg8[%c24_25, %c32_26] : memref<32x64xf32, #tpu.memory_space<vmem>>, vector<4x32xf32>
    tpu.vector_store %arg8[%c24_25, %c32_26], %86 {strides = array<i32>} : memref<32x64xf32, #tpu.memory_space<vmem>>, vector<4x32xf32>,
    %89 = tpu.concatenate %77, %86 in 1 : vector<4x32xf32>, vector<4x32xf32> -> vector<4x64xf32>
    %cst_27 = arith.constant dense<0.000000e+00> : vector<4x256xf32>
    %90 = tpu.matmul %89, %7, %cst_27 {dimension_numbers = #tpu.dot_dimension_numbers<[1], [0], [0], [1], [0, 0, 1, 1], [], []>} : vector<4x64xf32>, vector<64x256xf32>, vector<4x256xf32> -> vector<4x256xf32>
    %c8 = arith.constant 8 : index
    %c0_28 = arith.constant 0 : index
    %91 = vector.load %arg7[%c8, %c0_28] : memref<32x256xf32, #tpu.memory_space<vmem>>, vector<4x128xf32>
    %c20 = arith.constant 20 : index
    %c128_29 = arith.constant 128 : index
    %92 = vector.load %arg7[%c20, %c128_29] : memref<32x256xf32, #tpu.memory_space<vmem>>, vector<4x128xf32>
    %93 = vector.extract_strided_slice %90 {offsets = [0, 0], sizes = [4, 128], strides = [1, 1]} : vector<4x256xf32> to vector<4x128xf32>
    %94 = arith.addf %93, %91 : vector<4x128xf32>
    %95 = vector.extract_strided_slice %90 {offsets = [0, 128], sizes = [4, 128], strides = [1, 1]} : vector<4x256xf32> to vector<4x128xf32>
    %96 = arith.addf %95, %92 : vector<4x128xf32>
    %97 = arith.negf %94 : vector<4x128xf32>
    %98 = math.exp %97 : vector<4x128xf32>
    %cst_30 = arith.constant 1.000000e+00 : f32
    %99 = vector.broadcast %cst_30 : f32 to vector<4x128xf32>
    %100 = arith.addf %99, %98 : vector<4x128xf32>
    %101 = arith.divf %99, %100 : vector<4x128xf32>
    %102 = math.tanh %94 : vector<4x128xf32>
    %103 = arith.negf %96 : vector<4x128xf32>
    %104 = math.exp %103 : vector<4x128xf32>
    %cst_31 = arith.constant 1.000000e+00 : f32
    %105 = vector.broadcast %cst_31 : f32 to vector<4x128xf32>
    %106 = arith.addf %105, %104 : vector<4x128xf32>
    %107 = arith.divf %105, %106 : vector<4x128xf32>
    %108 = math.tanh %96 : vector<4x128xf32>
    %109 = vector.extract_strided_slice %101 {offsets = [0, 32], sizes = [4, 32], strides = [1, 1]} : vector<4x128xf32> to vector<4x32xf32>
    %110 = arith.mulf %109, %74 : vector<4x32xf32>
    %111 = vector.extract_strided_slice %101 {offsets = [0, 0], sizes = [4, 32], strides = [1, 1]} : vector<4x128xf32> to vector<4x32xf32>
    %112 = vector.extract_strided_slice %102 {offsets = [0, 64], sizes = [4, 32], strides = [1, 1]} : vector<4x128xf32> to vector<4x32xf32>
    %113 = arith.mulf %111, %112 : vector<4x32xf32>
    %114 = arith.addf %110, %113 : vector<4x32xf32>
    %115 = vector.extract_strided_slice %101 {offsets = [0, 96], sizes = [4, 32], strides = [1, 1]} : vector<4x128xf32> to vector<4x32xf32>
    %116 = math.tanh %114 : vector<4x32xf32>
    %117 = arith.mulf %115, %116 : vector<4x32xf32>
    %118 = vector.extract_strided_slice %107 {offsets = [0, 32], sizes = [4, 32], strides = [1, 1]} : vector<4x128xf32> to vector<4x32xf32>
    %119 = arith.mulf %118, %83 : vector<4x32xf32>
    %120 = vector.extract_strided_slice %107 {offsets = [0, 0], sizes = [4, 32], strides = [1, 1]} : vector<4x128xf32> to vector<4x32xf32>
    %121 = vector.extract_strided_slice %108 {offsets = [0, 64], sizes = [4, 32], strides = [1, 1]} : vector<4x128xf32> to vector<4x32xf32>
    %122 = arith.mulf %120, %121 : vector<4x32xf32>
    %123 = arith.addf %119, %122 : vector<4x32xf32>
    %124 = vector.extract_strided_slice %107 {offsets = [0, 96], sizes = [4, 32], strides = [1, 1]} : vector<4x128xf32> to vector<4x32xf32>
    %125 = math.tanh %123 : vector<4x32xf32>
    %126 = arith.mulf %124, %125 : vector<4x32xf32>
    %c8_32 = arith.constant 8 : index
    %c0_33 = arith.constant 0 : index
    %127 = vector.load %arg8[%c8_32, %c0_33] : memref<32x64xf32, #tpu.memory_space<vmem>>, vector<4x32xf32>
    tpu.vector_store %arg8[%c8_32, %c0_33], %117 {strides = array<i32>} : memref<32x64xf32, #tpu.memory_space<vmem>>, vector<4x32xf32>,
    %c20_34 = arith.constant 20 : index
    %c32_35 = arith.constant 32 : index
    %128 = vector.load %arg8[%c20_34, %c32_35] : memref<32x64xf32, #tpu.memory_space<vmem>>, vector<4x32xf32>
    tpu.vector_store %arg8[%c20_34, %c32_35], %126 {strides = array<i32>} : memref<32x64xf32, #tpu.memory_space<vmem>>, vector<4x32xf32>,
    %129 = tpu.concatenate %117, %126 in 1 : vector<4x32xf32>, vector<4x32xf32> -> vector<4x64xf32>
    %cst_36 = arith.constant dense<0.000000e+00> : vector<4x256xf32>
    %130 = tpu.matmul %129, %7, %cst_36 {dimension_numbers = #tpu.dot_dimension_numbers<[1], [0], [0], [1], [0, 0, 1, 1], [], []>} : vector<4x64xf32>, vector<64x256xf32>, vector<4x256xf32> -> vector<4x256xf32>
    %c12 = arith.constant 12 : index
    %c0_37 = arith.constant 0 : index
    %131 = vector.load %arg7[%c12, %c0_37] : memref<32x256xf32, #tpu.memory_space<vmem>>, vector<4x128xf32>
    %c16 = arith.constant 16 : index
    %c128_38 = arith.constant 128 : index
    %132 = vector.load %arg7[%c16, %c128_38] : memref<32x256xf32, #tpu.memory_space<vmem>>, vector<4x128xf32>
    %133 = vector.extract_strided_slice %130 {offsets = [0, 0], sizes = [4, 128], strides = [1, 1]} : vector<4x256xf32> to vector<4x128xf32>
    %134 = arith.addf %133, %131 : vector<4x128xf32>
    %135 = vector.extract_strided_slice %130 {offsets = [0, 128], sizes = [4, 128], strides = [1, 1]} : vector<4x256xf32> to vector<4x128xf32>
    %136 = arith.addf %135, %132 : vector<4x128xf32>
    %137 = arith.negf %134 : vector<4x128xf32>
    %138 = math.exp %137 : vector<4x128xf32>
    %cst_39 = arith.constant 1.000000e+00 : f32
    %139 = vector.broadcast %cst_39 : f32 to vector<4x128xf32>
    %140 = arith.addf %139, %138 : vector<4x128xf32>
    %141 = arith.divf %139, %140 : vector<4x128xf32>
    %142 = math.tanh %134 : vector<4x128xf32>
    %143 = arith.negf %136 : vector<4x128xf32>
    %144 = math.exp %143 : vector<4x128xf32>
    %cst_40 = arith.constant 1.000000e+00 : f32
    %145 = vector.broadcast %cst_40 : f32 to vector<4x128xf32>
    %146 = arith.addf %145, %144 : vector<4x128xf32>
    %147 = arith.divf %145, %146 : vector<4x128xf32>
    %148 = math.tanh %136 : vector<4x128xf32>
    %149 = vector.extract_strided_slice %141 {offsets = [0, 32], sizes = [4, 32], strides = [1, 1]} : vector<4x128xf32> to vector<4x32xf32>
    %150 = arith.mulf %149, %114 : vector<4x32xf32>
    %151 = vector.extract_strided_slice %141 {offsets = [0, 0], sizes = [4, 32], strides = [1, 1]} : vector<4x128xf32> to vector<4x32xf32>
    %152 = vector.extract_strided_slice %142 {offsets = [0, 64], sizes = [4, 32], strides = [1, 1]} : vector<4x128xf32> to vector<4x32xf32>
    %153 = arith.mulf %151, %152 : vector<4x32xf32>
    %154 = arith.addf %150, %153 : vector<4x32xf32>
    %155 = vector.extract_strided_slice %141 {offsets = [0, 96], sizes = [4, 32], strides = [1, 1]} : vector<4x128xf32> to vector<4x32xf32>
    %156 = math.tanh %154 : vector<4x32xf32>
    %157 = arith.mulf %155, %156 : vector<4x32xf32>
    %158 = vector.extract_strided_slice %147 {offsets = [0, 32], sizes = [4, 32], strides = [1, 1]} : vector<4x128xf32> to vector<4x32xf32>
    %159 = arith.mulf %158, %123 : vector<4x32xf32>
    %160 = vector.extract_strided_slice %147 {offsets = [0, 0], sizes = [4, 32], strides = [1, 1]} : vector<4x128xf32> to vector<4x32xf32>
    %161 = vector.extract_strided_slice %148 {offsets = [0, 64], sizes = [4, 32], strides = [1, 1]} : vector<4x128xf32> to vector<4x32xf32>
    %162 = arith.mulf %160, %161 : vector<4x32xf32>
    %163 = arith.addf %159, %162 : vector<4x32xf32>
    %164 = vector.extract_strided_slice %147 {offsets = [0, 96], sizes = [4, 32], strides = [1, 1]} : vector<4x128xf32> to vector<4x32xf32>
    %165 = math.tanh %163 : vector<4x32xf32>
    %166 = arith.mulf %164, %165 : vector<4x32xf32>
    %c12_41 = arith.constant 12 : index
    %c0_42 = arith.constant 0 : index
    %167 = vector.load %arg8[%c12_41, %c0_42] : memref<32x64xf32, #tpu.memory_space<vmem>>, vector<4x32xf32>
    tpu.vector_store %arg8[%c12_41, %c0_42], %157 {strides = array<i32>} : memref<32x64xf32, #tpu.memory_space<vmem>>, vector<4x32xf32>,
    %c16_43 = arith.constant 16 : index
    %c32_44 = arith.constant 32 : index
    %168 = vector.load %arg8[%c16_43, %c32_44] : memref<32x64xf32, #tpu.memory_space<vmem>>, vector<4x32xf32>
    tpu.vector_store %arg8[%c16_43, %c32_44], %166 {strides = array<i32>} : memref<32x64xf32, #tpu.memory_space<vmem>>, vector<4x32xf32>,
    %169 = tpu.concatenate %157, %166 in 1 : vector<4x32xf32>, vector<4x32xf32> -> vector<4x64xf32>
    %cst_45 = arith.constant dense<0.000000e+00> : vector<4x256xf32>
    %170 = tpu.matmul %169, %7, %cst_45 {dimension_numbers = #tpu.dot_dimension_numbers<[1], [0], [0], [1], [0, 0, 1, 1], [], []>} : vector<4x64xf32>, vector<64x256xf32>, vector<4x256xf32> -> vector<4x256xf32>
    %c16_46 = arith.constant 16 : index
    %c0_47 = arith.constant 0 : index
    %171 = vector.load %arg7[%c16_46, %c0_47] : memref<32x256xf32, #tpu.memory_space<vmem>>, vector<4x128xf32>
    %c12_48 = arith.constant 12 : index
    %c128_49 = arith.constant 128 : index
    %172 = vector.load %arg7[%c12_48, %c128_49] : memref<32x256xf32, #tpu.memory_space<vmem>>, vector<4x128xf32>
    %173 = vector.extract_strided_slice %170 {offsets = [0, 0], sizes = [4, 128], strides = [1, 1]} : vector<4x256xf32> to vector<4x128xf32>
    %174 = arith.addf %173, %171 : vector<4x128xf32>
    %175 = vector.extract_strided_slice %170 {offsets = [0, 128], sizes = [4, 128], strides = [1, 1]} : vector<4x256xf32> to vector<4x128xf32>
    %176 = arith.addf %175, %172 : vector<4x128xf32>
    %177 = arith.negf %174 : vector<4x128xf32>
    %178 = math.exp %177 : vector<4x128xf32>
    %cst_50 = arith.constant 1.000000e+00 : f32
    %179 = vector.broadcast %cst_50 : f32 to vector<4x128xf32>
    %180 = arith.addf %179, %178 : vector<4x128xf32>
    %181 = arith.divf %179, %180 : vector<4x128xf32>
    %182 = math.tanh %174 : vector<4x128xf32>
    %183 = arith.negf %176 : vector<4x128xf32>
    %184 = math.exp %183 : vector<4x128xf32>
    %cst_51 = arith.constant 1.000000e+00 : f32
    %185 = vector.broadcast %cst_51 : f32 to vector<4x128xf32>
    %186 = arith.addf %185, %184 : vector<4x128xf32>
    %187 = arith.divf %185, %186 : vector<4x128xf32>
    %188 = math.tanh %176 : vector<4x128xf32>
    %189 = vector.extract_strided_slice %181 {offsets = [0, 32], sizes = [4, 32], strides = [1, 1]} : vector<4x128xf32> to vector<4x32xf32>
    %190 = arith.mulf %189, %154 : vector<4x32xf32>
    %191 = vector.extract_strided_slice %181 {offsets = [0, 0], sizes = [4, 32], strides = [1, 1]} : vector<4x128xf32> to vector<4x32xf32>
    %192 = vector.extract_strided_slice %182 {offsets = [0, 64], sizes = [4, 32], strides = [1, 1]} : vector<4x128xf32> to vector<4x32xf32>
    %193 = arith.mulf %191, %192 : vector<4x32xf32>
    %194 = arith.addf %190, %193 : vector<4x32xf32>
    %195 = vector.extract_strided_slice %181 {offsets = [0, 96], sizes = [4, 32], strides = [1, 1]} : vector<4x128xf32> to vector<4x32xf32>
    %196 = math.tanh %194 : vector<4x32xf32>
    %197 = arith.mulf %195, %196 : vector<4x32xf32>
    %198 = vector.extract_strided_slice %187 {offsets = [0, 32], sizes = [4, 32], strides = [1, 1]} : vector<4x128xf32> to vector<4x32xf32>
    %199 = arith.mulf %198, %163 : vector<4x32xf32>
    %200 = vector.extract_strided_slice %187 {offsets = [0, 0], sizes = [4, 32], strides = [1, 1]} : vector<4x128xf32> to vector<4x32xf32>
    %201 = vector.extract_strided_slice %188 {offsets = [0, 64], sizes = [4, 32], strides = [1, 1]} : vector<4x128xf32> to vector<4x32xf32>
    %202 = arith.mulf %200, %201 : vector<4x32xf32>
    %203 = arith.addf %199, %202 : vector<4x32xf32>
    %204 = vector.extract_strided_slice %187 {offsets = [0, 96], sizes = [4, 32], strides = [1, 1]} : vector<4x128xf32> to vector<4x32xf32>
    %205 = math.tanh %203 : vector<4x32xf32>
    %206 = arith.mulf %204, %205 : vector<4x32xf32>
    %c16_52 = arith.constant 16 : index
    %c0_53 = arith.constant 0 : index
    %207 = vector.load %arg8[%c16_52, %c0_53] : memref<32x64xf32, #tpu.memory_space<vmem>>, vector<4x32xf32>
    tpu.vector_store %arg8[%c16_52, %c0_53], %197 {strides = array<i32>} : memref<32x64xf32, #tpu.memory_space<vmem>>, vector<4x32xf32>,
    %c12_54 = arith.constant 12 : index
    %c32_55 = arith.constant 32 : index
    %208 = vector.load %arg8[%c12_54, %c32_55] : memref<32x64xf32, #tpu.memory_space<vmem>>, vector<4x32xf32>
    tpu.vector_store %arg8[%c12_54, %c32_55], %206 {strides = array<i32>} : memref<32x64xf32, #tpu.memory_space<vmem>>, vector<4x32xf32>,
    %209 = tpu.concatenate %197, %206 in 1 : vector<4x32xf32>, vector<4x32xf32> -> vector<4x64xf32>
    %cst_56 = arith.constant dense<0.000000e+00> : vector<4x256xf32>
    %210 = tpu.matmul %209, %7, %cst_56 {dimension_numbers = #tpu.dot_dimension_numbers<[1], [0], [0], [1], [0, 0, 1, 1], [], []>} : vector<4x64xf32>, vector<64x256xf32>, vector<4x256xf32> -> vector<4x256xf32>
    %c20_57 = arith.constant 20 : index
    %c0_58 = arith.constant 0 : index
    %211 = vector.load %arg7[%c20_57, %c0_58] : memref<32x256xf32, #tpu.memory_space<vmem>>, vector<4x128xf32>
    %c8_59 = arith.constant 8 : index
    %c128_60 = arith.constant 128 : index
    %212 = vector.load %arg7[%c8_59, %c128_60] : memref<32x256xf32, #tpu.memory_space<vmem>>, vector<4x128xf32>
    %213 = vector.extract_strided_slice %210 {offsets = [0, 0], sizes = [4, 128], strides = [1, 1]} : vector<4x256xf32> to vector<4x128xf32>
    %214 = arith.addf %213, %211 : vector<4x128xf32>
    %215 = vector.extract_strided_slice %210 {offsets = [0, 128], sizes = [4, 128], strides = [1, 1]} : vector<4x256xf32> to vector<4x128xf32>
    %216 = arith.addf %215, %212 : vector<4x128xf32>
    %217 = arith.negf %214 : vector<4x128xf32>
    %218 = math.exp %217 : vector<4x128xf32>
    %cst_61 = arith.constant 1.000000e+00 : f32
    %219 = vector.broadcast %cst_61 : f32 to vector<4x128xf32>
    %220 = arith.addf %219, %218 : vector<4x128xf32>
    %221 = arith.divf %219, %220 : vector<4x128xf32>
    %222 = math.tanh %214 : vector<4x128xf32>
    %223 = arith.negf %216 : vector<4x128xf32>
    %224 = math.exp %223 : vector<4x128xf32>
    %cst_62 = arith.constant 1.000000e+00 : f32
    %225 = vector.broadcast %cst_62 : f32 to vector<4x128xf32>
    %226 = arith.addf %225, %224 : vector<4x128xf32>
    %227 = arith.divf %225, %226 : vector<4x128xf32>
    %228 = math.tanh %216 : vector<4x128xf32>
    %229 = vector.extract_strided_slice %221 {offsets = [0, 32], sizes = [4, 32], strides = [1, 1]} : vector<4x128xf32> to vector<4x32xf32>
    %230 = arith.mulf %229, %194 : vector<4x32xf32>
    %231 = vector.extract_strided_slice %221 {offsets = [0, 0], sizes = [4, 32], strides = [1, 1]} : vector<4x128xf32> to vector<4x32xf32>
    %232 = vector.extract_strided_slice %222 {offsets = [0, 64], sizes = [4, 32], strides = [1, 1]} : vector<4x128xf32> to vector<4x32xf32>
    %233 = arith.mulf %231, %232 : vector<4x32xf32>
    %234 = arith.addf %230, %233 : vector<4x32xf32>
    %235 = vector.extract_strided_slice %221 {offsets = [0, 96], sizes = [4, 32], strides = [1, 1]} : vector<4x128xf32> to vector<4x32xf32>
    %236 = math.tanh %234 : vector<4x32xf32>
    %237 = arith.mulf %235, %236 : vector<4x32xf32>
    %238 = vector.extract_strided_slice %227 {offsets = [0, 32], sizes = [4, 32], strides = [1, 1]} : vector<4x128xf32> to vector<4x32xf32>
    %239 = arith.mulf %238, %203 : vector<4x32xf32>
    %240 = vector.extract_strided_slice %227 {offsets = [0, 0], sizes = [4, 32], strides = [1, 1]} : vector<4x128xf32> to vector<4x32xf32>
    %241 = vector.extract_strided_slice %228 {offsets = [0, 64], sizes = [4, 32], strides = [1, 1]} : vector<4x128xf32> to vector<4x32xf32>
    %242 = arith.mulf %240, %241 : vector<4x32xf32>
    %243 = arith.addf %239, %242 : vector<4x32xf32>
    %244 = vector.extract_strided_slice %227 {offsets = [0, 96], sizes = [4, 32], strides = [1, 1]} : vector<4x128xf32> to vector<4x32xf32>
    %245 = math.tanh %243 : vector<4x32xf32>
    %246 = arith.mulf %244, %245 : vector<4x32xf32>
    %c20_63 = arith.constant 20 : index
    %c0_64 = arith.constant 0 : index
    %247 = vector.load %arg8[%c20_63, %c0_64] : memref<32x64xf32, #tpu.memory_space<vmem>>, vector<4x32xf32>
    tpu.vector_store %arg8[%c20_63, %c0_64], %237 {strides = array<i32>} : memref<32x64xf32, #tpu.memory_space<vmem>>, vector<4x32xf32>,
    %c8_65 = arith.constant 8 : index
    %c32_66 = arith.constant 32 : index
    %248 = vector.load %arg8[%c8_65, %c32_66] : memref<32x64xf32, #tpu.memory_space<vmem>>, vector<4x32xf32>
    tpu.vector_store %arg8[%c8_65, %c32_66], %246 {strides = array<i32>} : memref<32x64xf32, #tpu.memory_space<vmem>>, vector<4x32xf32>,
    %249 = tpu.concatenate %237, %246 in 1 : vector<4x32xf32>, vector<4x32xf32> -> vector<4x64xf32>
    %cst_67 = arith.constant dense<0.000000e+00> : vector<4x256xf32>
    %250 = tpu.matmul %249, %7, %cst_67 {dimension_numbers = #tpu.dot_dimension_numbers<[1], [0], [0], [1], [0, 0, 1, 1], [], []>} : vector<4x64xf32>, vector<64x256xf32>, vector<4x256xf32> -> vector<4x256xf32>
    %c24_68 = arith.constant 24 : index
    %c0_69 = arith.constant 0 : index
    %251 = vector.load %arg7[%c24_68, %c0_69] : memref<32x256xf32, #tpu.memory_space<vmem>>, vector<4x128xf32>
    %c4_70 = arith.constant 4 : index
    %c128_71 = arith.constant 128 : index
    %252 = vector.load %arg7[%c4_70, %c128_71] : memref<32x256xf32, #tpu.memory_space<vmem>>, vector<4x128xf32>
    %253 = vector.extract_strided_slice %250 {offsets = [0, 0], sizes = [4, 128], strides = [1, 1]} : vector<4x256xf32> to vector<4x128xf32>
    %254 = arith.addf %253, %251 : vector<4x128xf32>
    %255 = vector.extract_strided_slice %250 {offsets = [0, 128], sizes = [4, 128], strides = [1, 1]} : vector<4x256xf32> to vector<4x128xf32>
    %256 = arith.addf %255, %252 : vector<4x128xf32>
    %257 = arith.negf %254 : vector<4x128xf32>
    %258 = math.exp %257 : vector<4x128xf32>
    %cst_72 = arith.constant 1.000000e+00 : f32
    %259 = vector.broadcast %cst_72 : f32 to vector<4x128xf32>
    %260 = arith.addf %259, %258 : vector<4x128xf32>
    %261 = arith.divf %259, %260 : vector<4x128xf32>
    %262 = math.tanh %254 : vector<4x128xf32>
    %263 = arith.negf %256 : vector<4x128xf32>
    %264 = math.exp %263 : vector<4x128xf32>
    %cst_73 = arith.constant 1.000000e+00 : f32
    %265 = vector.broadcast %cst_73 : f32 to vector<4x128xf32>
    %266 = arith.addf %265, %264 : vector<4x128xf32>
    %267 = arith.divf %265, %266 : vector<4x128xf32>
    %268 = math.tanh %256 : vector<4x128xf32>
    %269 = vector.extract_strided_slice %261 {offsets = [0, 32], sizes = [4, 32], strides = [1, 1]} : vector<4x128xf32> to vector<4x32xf32>
    %270 = arith.mulf %269, %234 : vector<4x32xf32>
    %271 = vector.extract_strided_slice %261 {offsets = [0, 0], sizes = [4, 32], strides = [1, 1]} : vector<4x128xf32> to vector<4x32xf32>
    %272 = vector.extract_strided_slice %262 {offsets = [0, 64], sizes = [4, 32], strides = [1, 1]} : vector<4x128xf32> to vector<4x32xf32>
    %273 = arith.mulf %271, %272 : vector<4x32xf32>
    %274 = arith.addf %270, %273 : vector<4x32xf32>
    %275 = vector.extract_strided_slice %261 {offsets = [0, 96], sizes = [4, 32], strides = [1, 1]} : vector<4x128xf32> to vector<4x32xf32>
    %276 = math.tanh %274 : vector<4x32xf32>
    %277 = arith.mulf %275, %276 : vector<4x32xf32>
    %278 = vector.extract_strided_slice %267 {offsets = [0, 32], sizes = [4, 32], strides = [1, 1]} : vector<4x128xf32> to vector<4x32xf32>
    %279 = arith.mulf %278, %243 : vector<4x32xf32>
    %280 = vector.extract_strided_slice %267 {offsets = [0, 0], sizes = [4, 32], strides = [1, 1]} : vector<4x128xf32> to vector<4x32xf32>
    %281 = vector.extract_strided_slice %268 {offsets = [0, 64], sizes = [4, 32], strides = [1, 1]} : vector<4x128xf32> to vector<4x32xf32>
    %282 = arith.mulf %280, %281 : vector<4x32xf32>
    %283 = arith.addf %279, %282 : vector<4x32xf32>
    %284 = vector.extract_strided_slice %267 {offsets = [0, 96], sizes = [4, 32], strides = [1, 1]} : vector<4x128xf32> to vector<4x32xf32>
    %285 = math.tanh %283 : vector<4x32xf32>
    %286 = arith.mulf %284, %285 : vector<4x32xf32>
    %c24_74 = arith.constant 24 : index
    %c0_75 = arith.constant 0 : index
    %287 = vector.load %arg8[%c24_74, %c0_75] : memref<32x64xf32, #tpu.memory_space<vmem>>, vector<4x32xf32>
    tpu.vector_store %arg8[%c24_74, %c0_75], %277 {strides = array<i32>} : memref<32x64xf32, #tpu.memory_space<vmem>>, vector<4x32xf32>,
    %c4_76 = arith.constant 4 : index
    %c32_77 = arith.constant 32 : index
    %288 = vector.load %arg8[%c4_76, %c32_77] : memref<32x64xf32, #tpu.memory_space<vmem>>, vector<4x32xf32>
    tpu.vector_store %arg8[%c4_76, %c32_77], %286 {strides = array<i32>} : memref<32x64xf32, #tpu.memory_space<vmem>>, vector<4x32xf32>,
    %289 = tpu.concatenate %277, %286 in 1 : vector<4x32xf32>, vector<4x32xf32> -> vector<4x64xf32>
    %cst_78 = arith.constant dense<0.000000e+00> : vector<4x256xf32>
    %290 = tpu.matmul %289, %7, %cst_78 {dimension_numbers = #tpu.dot_dimension_numbers<[1], [0], [0], [1], [0, 0, 1, 1], [], []>} : vector<4x64xf32>, vector<64x256xf32>, vector<4x256xf32> -> vector<4x256xf32>
    %c28_79 = arith.constant 28 : index
    %c0_80 = arith.constant 0 : index
    %291 = vector.load %arg7[%c28_79, %c0_80] : memref<32x256xf32, #tpu.memory_space<vmem>>, vector<4x128xf32>
    %c0_81 = arith.constant 0 : index
    %c128_82 = arith.constant 128 : index
    %292 = vector.load %arg7[%c0_81, %c128_82] : memref<32x256xf32, #tpu.memory_space<vmem>>, vector<4x128xf32>
    %293 = vector.extract_strided_slice %290 {offsets = [0, 0], sizes = [4, 128], strides = [1, 1]} : vector<4x256xf32> to vector<4x128xf32>
    %294 = arith.addf %293, %291 : vector<4x128xf32>
    %295 = vector.extract_strided_slice %290 {offsets = [0, 128], sizes = [4, 128], strides = [1, 1]} : vector<4x256xf32> to vector<4x128xf32>
    %296 = arith.addf %295, %292 : vector<4x128xf32>
    %297 = arith.negf %294 : vector<4x128xf32>
    %298 = math.exp %297 : vector<4x128xf32>
    %cst_83 = arith.constant 1.000000e+00 : f32
    %299 = vector.broadcast %cst_83 : f32 to vector<4x128xf32>
    %300 = arith.addf %299, %298 : vector<4x128xf32>
    %301 = arith.divf %299, %300 : vector<4x128xf32>
    %302 = math.tanh %294 : vector<4x128xf32>
    %303 = arith.negf %296 : vector<4x128xf32>
    %304 = math.exp %303 : vector<4x128xf32>
    %cst_84 = arith.constant 1.000000e+00 : f32
    %305 = vector.broadcast %cst_84 : f32 to vector<4x128xf32>
    %306 = arith.addf %305, %304 : vector<4x128xf32>
    %307 = arith.divf %305, %306 : vector<4x128xf32>
    %308 = math.tanh %296 : vector<4x128xf32>
    %309 = vector.extract_strided_slice %301 {offsets = [0, 32], sizes = [4, 32], strides = [1, 1]} : vector<4x128xf32> to vector<4x32xf32>
    %310 = arith.mulf %309, %274 : vector<4x32xf32>
    %311 = vector.extract_strided_slice %301 {offsets = [0, 0], sizes = [4, 32], strides = [1, 1]} : vector<4x128xf32> to vector<4x32xf32>
    %312 = vector.extract_strided_slice %302 {offsets = [0, 64], sizes = [4, 32], strides = [1, 1]} : vector<4x128xf32> to vector<4x32xf32>
    %313 = arith.mulf %311, %312 : vector<4x32xf32>
    %314 = arith.addf %310, %313 : vector<4x32xf32>
    %315 = vector.extract_strided_slice %301 {offsets = [0, 96], sizes = [4, 32], strides = [1, 1]} : vector<4x128xf32> to vector<4x32xf32>
    %316 = math.tanh %314 : vector<4x32xf32>
    %317 = arith.mulf %315, %316 : vector<4x32xf32>
    %318 = vector.extract_strided_slice %307 {offsets = [0, 32], sizes = [4, 32], strides = [1, 1]} : vector<4x128xf32> to vector<4x32xf32>
    %319 = arith.mulf %318, %283 : vector<4x32xf32>
    %320 = vector.extract_strided_slice %307 {offsets = [0, 0], sizes = [4, 32], strides = [1, 1]} : vector<4x128xf32> to vector<4x32xf32>
    %321 = vector.extract_strided_slice %308 {offsets = [0, 64], sizes = [4, 32], strides = [1, 1]} : vector<4x128xf32> to vector<4x32xf32>
    %322 = arith.mulf %320, %321 : vector<4x32xf32>
    %323 = arith.addf %319, %322 : vector<4x32xf32>
    %324 = vector.extract_strided_slice %307 {offsets = [0, 96], sizes = [4, 32], strides = [1, 1]} : vector<4x128xf32> to vector<4x32xf32>
    %325 = math.tanh %323 : vector<4x32xf32>
    %326 = arith.mulf %324, %325 : vector<4x32xf32>
    %c28_85 = arith.constant 28 : index
    %c0_86 = arith.constant 0 : index
    %327 = vector.load %arg8[%c28_85, %c0_86] : memref<32x64xf32, #tpu.memory_space<vmem>>, vector<4x32xf32>
    tpu.vector_store %arg8[%c28_85, %c0_86], %317 {strides = array<i32>} : memref<32x64xf32, #tpu.memory_space<vmem>>, vector<4x32xf32>,
    %c0_87 = arith.constant 0 : index
    %c32_88 = arith.constant 32 : index
    %328 = vector.load %arg8[%c0_87, %c32_88] : memref<32x64xf32, #tpu.memory_space<vmem>>, vector<4x32xf32>
    tpu.vector_store %arg8[%c0_87, %c32_88], %326 {strides = array<i32>} : memref<32x64xf32, #tpu.memory_space<vmem>>, vector<4x32xf32>,
    %c0_89 = arith.constant 0 : index
    %c0_90 = arith.constant 0 : index
    %329 = vector.load %arg8[%c0_89, %c0_90] : memref<32x64xf32, #tpu.memory_space<vmem>>, vector<32x64xf32>
    %c0_91 = arith.constant 0 : index
    %c0_92 = arith.constant 0 : index
    %330 = vector.load %arg4[%c0_91, %c0_92] : memref<64x16xf32, #tpu.memory_space<vmem>>, vector<64x16xf32>
    %cst_93 = arith.constant dense<0.000000e+00> : vector<32x16xf32>
    %331 = tpu.matmul %329, %330, %cst_93 {dimension_numbers = #tpu.dot_dimension_numbers<[1], [0], [0], [1], [0, 0, 1, 1], [], []>} : vector<32x64xf32>, vector<64x16xf32>, vector<32x16xf32> -> vector<32x16xf32>
    %c0_94 = arith.constant 0 : index
    %c0_95 = arith.constant 0 : index
    %332 = vector.load %arg5[%c0_94, %c0_95] : memref<1x16xf32, #tpu.memory_space<vmem>>, vector<1x16xf32>
    %333 = vector.broadcast %332 : vector<1x16xf32> to vector<32x16xf32>
    %334 = arith.addf %331, %333 : vector<32x16xf32>
    %c0_96 = arith.constant 0 : index
    %c0_97 = arith.constant 0 : index
    %335 = vector.load %arg6[%c0_96, %c0_97] : memref<32x16xf32, #tpu.memory_space<vmem>>, vector<32x16xf32>
    tpu.vector_store %arg6[%c0_96, %c0_97], %334 {strides = array<i32>} : memref<32x16xf32, #tpu.memory_space<vmem>>, vector<32x16xf32>,
    return
  }
}

</mosaic_0001>

<bundles_post_ra>
// kernel: lstm_tagger_forward.1
= control target key start
LH: loop header
LB: loop body
LE: loop exit
PB: predicated region body
PF: predicated region fallthrough
CT: control target
= control target key end

     0   :  { %v1809_v7 = vmov 0.0   ;;  %vm48_vm0 = vcmask 261120   ;;  %s2175_s0 = inlined_call_operand.vmem [shape: f32[32,32], index: 0, kind: input, shape index: {}]   ;;  %s2176_s1 = inlined_call_operand.vmem [shape: f32[32,256], index: 1, kind: input, shape index: {}]   ;;  %s2177_s2 = inlined_call_operand.vmem [shape: f32[64,256], index: 2, kind: input, shape index: {}]   ;;  %s2178_s3 = inlined_call_operand.vmem [shape: f32[1,256], index: 3, kind: input, shape index: {}]   ;;  %s2179_s4 = inlined_call_operand.vmem [shape: f32[64,16], index: 4, kind: input, shape index: {}]   ;;  %s2180_s5 = inlined_call_operand.vmem [shape: f32[1,16], index: 5, kind: input, shape index: {}]   ;;  %s2181_s6 = inlined_call_operand.hbm [shape: f32[32,16], index: 6, kind: output, shape index: {}]  }
   0x1   :  { %v29_v0 = vld [vmem:[%s2176_s1 + $0x8] sm:$0xff]  ;;  %v31_v1 = vld [vmem:[%s2176_s1 + $0x18] sm:$0xff]  ;;  %v28_v2 = vld [vmem:[%s2176_s1] sm:$0xff]  ;;  %125 = vmatprep.mubr.f32.mxu0 %v1809_v7  ;;  %242 = vmatprep.mubr.f32.mxu1 %v1809_v7 }
   0x2   :  { %v1499_v3 = vpack.c.bf16 %v31_v1, %v29_v0  ;;  %v30_v4 = vld [vmem:[%s2176_s1 + $0x10] sm:$0xff]  ;;  %v159_v5 = vld [vmem:[%s2177_s2 + $0x8] sm:$0xff]  ;;  %v161_v6 = vld [vmem:[%s2177_s2 + $0x18] sm:$0xff] }
   0x3   :  { %v1501_v8 = vpack.c.bf16 %v30_v4, %v28_v2  ;;  %v1870_v9 = vpack.c.bf16 %v161_v6, %v159_v5  ;;  %v158_v10 = vld [vmem:[%s2177_s2] sm:$0xff]  ;;  %v160_v11 = vld [vmem:[%s2177_s2 + $0x10] sm:$0xff]  ;;  %v33_v12 = vld [vmem:[%s2176_s1 + $0x28] sm:$0xff] }
   0x4   :  { %1500 = vmatprep.subr.bf16.mxu0 %v1499_v3  ;;  %v1881_v13 = vpack.c.bf16 %v160_v11, %v158_v10  ;;  %v35_v14 = vld [vmem:[%s2176_s1 + $0x38] sm:$0xff]  ;;  %v32_v15 = vld [vmem:[%s2176_s1 + $0x20] sm:$0xff]  ;;  %v34_v16 = vld [vmem:[%s2176_s1 + $0x30] sm:$0xff] }
   0x5   :  { %1502 = vmatpush1.bf16.msra.mxu0 %v1501_v8  ;;  %1508 = vmatprep.subr.bf16.mxu1 %v1870_v9  ;;  %v1503_v17 = vpack.c.bf16 %v35_v14, %v33_v12  ;;  %v1505_v18 = vpack.c.bf16 %v34_v16, %v32_v15  ;;  %v163_v19 = vld [vmem:[%s2177_s2 + $0x28] sm:$0xff]  ;;  %v165_v20 = vld [vmem:[%s2177_s2 + $0x38] sm:$0xff]  ;;  %v162_v21 = vld [vmem:[%s2177_s2 + $0x20] sm:$0xff] }
   0x6   :  { %1510 = vmatpush1.bf16.msra.mxu1 %v1881_v13  ;;  %v1903_v22 = vpack.c.bf16 %v165_v20, %v163_v19  ;;  %v164_v23 = vld [vmem:[%s2177_s2 + $0x30] sm:$0xff]  ;;  %v167_v24 = vld [vmem:[%s2177_s2 + $0x48] sm:$0xff]  ;;  %v169_v26 = vld [vmem:[%s2177_s2 + $0x58] sm:$0xff] }
   0x7   :  { %1504 = vmatprep.subr.bf16.mxu0 %v1503_v17  ;;  %v1911_v25 = vpack.c.bf16 %v164_v23, %v162_v21  ;;  %v166_v27 = vld [vmem:[%s2177_s2 + $0x40] sm:$0xff]  ;;  %v168_v28 = vld [vmem:[%s2177_s2 + $0x50] sm:$0xff]  ;;  %v1923_v29 = vpack.c.bf16 %v169_v26, %v167_v24  ;;  %v171_v30 = vld [vmem:[%s2177_s2 + $0x68] sm:$0xff] }
   0x8   :  { %1512 = vmatprep.subr.bf16.mxu1 %v1903_v22  ;;  %v173_v31 = vld [vmem:[%s2177_s2 + $0x78] sm:$0xff]  ;;  %v24_v32 = vld [vmem:[%s2175_s0] sm:$0xff]  ;;  %v1935_v33 = vpack.c.bf16 %v168_v28, %v166_v27 }
   0x9   :  { %1506 = vmatpush1.bf16.msra.mxu0 %v1505_v18 }
   0xa   :  { %1514 = vmatpush1.bf16.msra.mxu1 %v1911_v25  ;;  %1524 = vmatprep.subr.bf16.mxu0 %v1870_v9 }
   0xb   :  { %11 = vsyncpa [#allocation5], 0  ;;  %1516 = vmatprep.subr.bf16.mxu1 %v1923_v29  ;;  %v1939_v34 = vpack.c.bf16 %v173_v31, %v171_v30  ;;  %v170_v35 = vld [vmem:[%s2177_s2 + $0x60] sm:$0xff]  ;;  %v172_v36 = vld [vmem:[%s2177_s2 + $0x70] sm:$0xff]  ;;  %v38_v41 = vlaneseq  ;;  %s1811_s27 = smov 32   ;;  %vm308_vm1 = vcmask 257024  }
   0xc   :  { %1433 = vmatmul.mubr.msk.f32.vlgmr.msra.gmra.mrb[0].mxu0 %vm48_vm0, %v24_v32  ;;  %v25_v37 = vld [vmem:[%s2175_s0 + $0x8] sm:$0xff]  ;;  %v1954_v38 = vpack.c.bf16 %v172_v36, %v170_v35  ;;  %v26_v39 = vld [vmem:[%s2175_s0 + $0x10] sm:$0xff]  ;;  %v27_v40 = vld [vmem:[%s2175_s0 + $0x18] sm:$0xff]  ;;  %vm314_vm2 = vcmask 519424   ;;  %vm174_vm3 = vcmask 523264   ;;  %vm1412_vm4 = vcmask 130048  }
   0xd   :  { %131 = vmatprep.mubr.f32.mxu0 %v1809_v7  ;;  %1526 = vmatpush1.bf16.msra.mxu0 %v1881_v13  ;;  %v39_v42 = vshrl.u32 %v38_v41, 7  ;;  %v36_v44 = vld [vmem:[%s2178_s3] sm:$0x3]  ;;  %s1810_s3 = smov 64   ;;  %s1812_s21 = smov [#allocation4]  }
   0xe   :  { %1518 = vmatpush1.bf16.msra.mxu1 %v1935_v33  ;;  %1528 = vmatprep.subr.bf16.mxu0 %v1903_v22  ;;  %s1422_s22 = sshll.u32 %s1812_s21, 4  ;;  %s1423_s22 = int_to_ptr.vmem [resolvable:$true] %s1422_s22 }
   0xf   :  { %1520 = vmatprep.subr.bf16.mxu1 %v1939_v34  ;;  %v40_v43 = vsub.s32 0, %v39_v42  ;;  %v44_v45 = vsub.s32 1, %v39_v42  ;;  %s1785_s23 = scalar_lea.vmem %s1423_s22, 512  ;;  %p1790_p1 = scmp.lt.s32.totalorder %s1423_s22, %s1423_s22 }
  0x10   :  { %1434 = vmatmul.mubr.msk.f32.gmra.mrb[2].mxu0 %vm48_vm0, %v25_v37  ;;  %p1786_p0 = scmp.ne.s32.totalorder %s1423_s22, %s1785_s23  ;;  %p1791_p2 = scmp.lt.s32.totalorder %s1785_s23, %s1785_s23 }
  0x11   :  { %137 = vmatprep.mubr.f32.mxu0 %v1809_v7  ;;  %1530 = vmatpush1.bf16.msra.mxu0 %v1911_v25  ;;  %v41_v46 = vrot.slane %v36_v44, %v40_v43  ;;  %v45_v47 = vrot.slane %v36_v44, %v44_v45 }
  0x12   :  { %1522 = vmatpush1.bf16.msra.mxu1 %v1954_v38  ;;  %1532 = vmatprep.subr.bf16.mxu0 %v1923_v29  ;;  %p1792_p3 = por %p1791_p2, %p1790_p1 }
  0x13   :  { %1540 = vmatprep.subr.bf16.mxu1 %v1870_v9 }
  0x14   :  { %1435 = vmatmul.mubr.msk.f32.gmra.mrb[4].mxu0 %vm48_vm0, %v26_v39  ;;  %p1793_p4 = pnand %p1792_p3, %p1786_p0 }
  0x15   :  { %243 = vmatmul.mubr.f32.vlgmr.msra.gmra.mrb[0].mxu1 %v1809_v7  ;;  %143 = vmatprep.mubr.f32.mxu0 %v1809_v7 }
  0x16   :  { %1534 = vmatpush1.bf16.msra.mxu0 %v1935_v33  ;;  %1542 = vmatpush1.bf16.msra.mxu1 %v1881_v13 }
  0x17   :  { %1536 = vmatprep.subr.bf16.mxu0 %v1939_v34  ;;  %1544 = vmatprep.subr.bf16.mxu1 %v1903_v22 }
  0x18   :  { %1436 = vmatmul.mubr.msk.f32.gmra.mrb[6].mxu0 %vm48_vm0, %v27_v40  ;;  %524 = vmatprep.mubr.f32.mxu1 %v1809_v7 }
  0x19   :  { %384 = vmatprep.mubr.f32.mxu0 %v1809_v7 }
  0x1a   :  { %1538 = vmatpush1.bf16.msra.mxu0 %v1954_v38  ;;  %1546 = vmatpush1.bf16.msra.mxu1 %v1911_v25 }
  0x1b   :  { %1548 = vmatprep.subr.bf16.mxu1 %v1923_v29  ;;  %1556 = vmatprep.subr.bf16.mxu0 %v1870_v9 }
  0x1e   :  { %1550 = vmatpush1.bf16.msra.mxu1 %v1935_v33 }
  0x1f   :  { %1552 = vmatprep.subr.bf16.mxu1 %v1939_v34 }
  0x22   :  { %1554 = vmatpush1.bf16.msra.mxu1 %v1954_v38 }
  0x23   :  { %1572 = vmatprep.subr.bf16.mxu1 %v1870_v9 }
  0xdf   :  { %v127_v48 = vpop.f32.mrb[0].mxu0 }
  0xe0   :  { %v128_v49 = vadd.f32 %v127_v48, %v41_v46  ;;  %v129_v50 = vpop.f32.mrb[1].mxu0 }
  0xe1   :  { %v130_v51 = vadd.f32 %v129_v50, %v45_v47 }
  0xe2   :  { %150 = vst [vmem:[#allocation2] sm:$0xff] %v128_v49 }
  0xe3   :  { %151 = vst [vmem:[#allocation2 + $0x8] sm:$0xff] %v130_v51  ;;  %v133_v52 = vpop.f32.mrb[2].mxu0 }
  0xe4   :  { %v134_v53 = vadd.f32 %v133_v52, %v41_v46  ;;  %v135_v54 = vpop.f32.mrb[3].mxu0 }
  0xe5   :  { %v136_v55 = vadd.f32 %v135_v54, %v45_v47 }
  0xe6   :  { %152 = vst [vmem:[#allocation2 + $0x10] sm:$0xff] %v134_v53 }
  0xe7   :  { %153 = vst [vmem:[#allocation2 + $0x18] sm:$0xff] %v136_v55  ;;  %v139_v56 = vpop.f32.mrb[4].mxu0 }
  0xe8   :  { %v140_v57 = vadd.f32 %v139_v56, %v41_v46  ;;  %v141_v58 = vpop.f32.mrb[5].mxu0  ;;  %v244_v59 = vpop.f32.mrb[0].mxu1 }
  0xe9   :  { %v142_v60 = vadd.f32 %v141_v58, %v45_v47  ;;  %v249_v61 = vld [vmem:[#allocation2] sm:$0xf]  ;;  %v246_v62 = vpop.f32.mrb[1].mxu1  ;;  %v391_v45 = vld [vmem:[#allocation2] sm:$0xf0] }
  0xea   :  { %154 = vst [vmem:[#allocation2 + $0x20] sm:$0xff] %v140_v57  ;;  %v251_v63 = vadd.f32 %v249_v61, %v244_v59 }
  0xeb   :  { %155 = vst [vmem:[#allocation2 + $0x28] sm:$0xff] %v142_v60  ;;  %v145_v0 = vpop.f32.mrb[6].mxu0 }
  0xec   :  { %1657 = vtanh.f32 %v251_v63  ;;  %v146_v1 = vadd.f32 %v145_v0, %v41_v46  ;;  %v147_v2 = vpop.f32.mrb[7].mxu0  ;;  %v1437_v11 = vmul.f32 -1.442695, %v251_v63  ;;  %v394_v46 = vrot.slane %v391_v45, 4 }
  0xed   :  { %v148_v3 = vadd.f32 %v147_v2, %v45_v47 }
  0xee   :  { %156 = vst [vmem:[#allocation2 + $0x30] sm:$0xff] %v146_v1 }
  0xef   :  { %157 = vst [vmem:[#allocation2 + $0x38] sm:$0xff] %v148_v3 }
  0xf6   :  { %v1658_v4 = vpop.eup %1657  ;;  %v250_v5 = vld [vmem:[#allocation2 + $0x38] sm:$0xf0]  ;;  %v392_v50 = vld [vmem:[#allocation2 + $0x38] sm:$0xf] }
  0xf7   :  { %v253_v6 = vrot.slane %v250_v5, 4  ;;  %272 = vrot.lane.b32.xlu0 %v1658_v4, %s1810_s3 }
  0xf9   :  { %v255_v8 = vadd.f32 %v253_v6, %v246_v62 }
  0xfb   :  { %1659 = vtanh.f32 %v255_v8  ;;  %v1438_v14 = vmul.f32 -1.442695, %v255_v8 }
  0xfc   :  { %1661 = vpow2.f32 %v1437_v11 }
  0xfd   :  { %1663 = vpow2.f32 %v1438_v14 }
 0x105   :  { %v1660_v10 = vpop.eup %1659 }
 0x106   :  { %289 = vrot.lane.b32.xlu0 %v1660_v10, %s1810_s3  ;;  %v1662_v12 = vpop.eup %1661 }
 0x107   :  { %v259_v15 = vadd.f32 1.0, %v1662_v12  ;;  %v1664_v16 = vpop.eup %1663 }
 0x108   :  { %v266_v20 = vadd.f32 1.0, %v1664_v16 }
 0x109   :  { %1665 = vrcp.f32 %v259_v15 }
 0x10a   :  { %1667 = vrcp.f32 %v266_v20  ;;  %v532_v20 = vld [vmem:[#allocation2 + $0x28] sm:$0xf0] }
 0x113   :  { %v1666_v17 = vpop.eup %1665 }
 0x114   :  { %v1668_v21 = vpop.eup %1667  ;;  %v270_v26 = vmul.f32 0.0, %v1666_v17 }
 0x115   :  { %v287_v31 = vmul.f32 0.0, %v1668_v21 }
 0x169   :  { %v273_v18 = vpop.permute.xlu0 %272 }
 0x16a   :  { %v275_v19 = vmul.f32 %v1666_v17, %v273_v18 }
 0x16c   :  { %277 = vrot.lane.b32.xlu1 %v275_v19, %s1811_s27 }
 0x178   :  { %v290_v23 = vpop.permute.xlu0 %289 }
 0x179   :  { %v292_v24 = vmul.f32 %v1668_v21, %v290_v23  ;;  %v531_v23 = vld [vmem:[#allocation2 + $0x10] sm:$0xf] }
 0x17b   :  { %294 = vrot.lane.b32.xlu1 %v292_v24, %s1811_s27  ;;  %v535_v24 = vrot.slane %v532_v20, 4 }
 0x1de   :  { %v278_v27 = vpop.permute.xlu1 %277 }
 0x1df   :  { %v1995_v28 = vadd.f32 %v278_v27, %v270_v26 }
 0x1e1   :  { %1669 = vtanh.f32 %v1995_v28 }
 0x1eb   :  { %v1670_v30 = vpop.eup %1669 }
 0x1ec   :  { %283 = vrot.lane.b32.xlu0 %v1670_v30, %s1810_s3 }
 0x1ed   :  { %v295_v32 = vpop.permute.xlu1 %294 }
 0x1ee   :  { %v297_v35 = vadd.f32 %v295_v32, %v287_v31 }
 0x1f0   :  { %1671 = vtanh.f32 %v297_v35 }
 0x1fa   :  { %v1672_v36 = vpop.eup %1671 }
 0x1fb   :  { %300 = vrot.lane.b32.xlu1 %v1672_v36, %s1810_s3 }
 0x25e   :  { %v284_v37 = vpop.permute.xlu0 %283 }
 0x25f   :  { %v286_v39 = vmul.f32 %v1666_v17, %v284_v37 }
 0x261   :  { %305 = vrot.lane.b32.xlu0 %v286_v39, %s1811_s27 }
 0x26d   :  { %v301_v40 = vpop.permute.xlu1 %300 }
 0x26e   :  { %v303_v41 = vmul.f32 %v1668_v21, %v301_v40 }
 0x270   :  { %311 = vrot.lane.b32.xlu1 %v303_v41, %s1810_s3 }
 0x2d3   :  { %v306_v42 = vpop.permute.xlu0 %305 }
 0x2d4   :  { %309 = vst.msk [vmem:[#allocation3] sm:$0xf] %vm308_vm1, %v306_v42 }
 0x2e2   :  { %v312_v43 = vpop.permute.xlu1 %311 }
 0x2e3   :  { %315 = vst.msk [vmem:[#allocation3 + $0x1c] sm:$0xf] %vm314_vm2, %v312_v43  ;;  %v316_v44 = vsel %vm48_vm0, %v306_v42, %v312_v43 }
 0x2e4   :  { %1439 = vmatmul.mubr.msk.f32.vlgmr.msra.gmra.mrb[8].mxu0 %vm174_vm3, %v316_v44 }
 0x2e5   :  { %1558 = vmatpush1.bf16.msra.mxu0 %v1881_v13  ;;  %664 = vmatprep.mubr.f32.mxu0 %v1809_v7 }
 0x2e6   :  { %1560 = vmatprep.subr.bf16.mxu0 %v1903_v22 }
 0x2e9   :  { %1562 = vmatpush1.bf16.msra.mxu0 %v1911_v25 }
 0x2ea   :  { %1564 = vmatprep.subr.bf16.mxu0 %v1923_v29 }
 0x2ed   :  { %1566 = vmatpush1.bf16.msra.mxu0 %v1935_v33 }
 0x2ee   :  { %1568 = vmatprep.subr.bf16.mxu0 %v1939_v34 }
 0x2f1   :  { %1570 = vmatpush1.bf16.msra.mxu0 %v1954_v38 }
 0x2f2   :  { %1588 = vmatprep.subr.bf16.mxu0 %v1870_v9 }
 0x3b7   :  { %v386_v47 = vpop.f32.mrb[8].mxu0 }
 0x3b8   :  { %v396_v48 = vadd.f32 %v394_v46, %v386_v47  ;;  %v388_v49 = vpop.f32.mrb[9].mxu0 }
 0x3b9   :  { %v397_v51 = vadd.f32 %v392_v50, %v388_v49 }
 0x3ba   :  { %1673 = vtanh.f32 %v396_v48  ;;  %v1440_v54 = vmul.f32 -1.442695, %v396_v48 }
 0x3bb   :  { %1675 = vtanh.f32 %v397_v51  ;;  %v1441_v55 = vmul.f32 -1.442695, %v397_v51 }
 0x3bc   :  { %1677 = vpow2.f32 %v1440_v54 }
 0x3bd   :  { %1679 = vpow2.f32 %v1441_v55 }
 0x3c4   :  { %v1674_v52 = vpop.eup %1673 }
 0x3c5   :  { %v1676_v53 = vpop.eup %1675  ;;  %414 = vrot.lane.b32.xlu0 %v1674_v52, %s1810_s3 }
 0x3c6   :  { %431 = vrot.lane.b32.xlu1 %v1676_v53, %s1810_s3  ;;  %v1678_v56 = vpop.eup %1677 }
 0x3c7   :  { %v1680_v57 = vpop.eup %1679  ;;  %v401_v58 = vadd.f32 1.0, %v1678_v56 }
 0x3c8   :  { %v408_v59 = vadd.f32 1.0, %v1680_v57 }
 0x3c9   :  { %1681 = vrcp.f32 %v401_v58 }
 0x3ca   :  { %1683 = vrcp.f32 %v408_v59 }
 0x3d3   :  { %v1682_v60 = vpop.eup %1681 }
 0x3d4   :  { %v1684_v62 = vpop.eup %1683  ;;  %v412_v2 = vmul.f32 %v1682_v60, %v1995_v28 }
 0x3d5   :  { %v429_v4 = vmul.f32 %v1684_v62, %v297_v35 }
 0x437   :  { %v415_v61 = vpop.permute.xlu0 %414 }
 0x438   :  { %v417_v63 = vmul.f32 %v1682_v60, %v415_v61  ;;  %v432_v0 = vpop.permute.xlu1 %431 }
 0x439   :  { %v434_v1 = vmul.f32 %v1684_v62, %v432_v0 }
 0x43a   :  { %419 = vrot.lane.b32.xlu0 %v417_v63, %s1811_s27 }
 0x43b   :  { %436 = vrot.lane.b32.xlu1 %v434_v1, %s1811_s27 }
 0x4ac   :  { %v420_v3 = vpop.permute.xlu0 %419 }
 0x4ad   :  { %v422_v5 = vadd.f32 %v420_v3, %v412_v2  ;;  %v437_v6 = vpop.permute.xlu1 %436  ;;  %v672_v3 = vld [vmem:[#allocation2 + $0x28] sm:$0xf] }
 0x4ae   :  { %v439_v8 = vadd.f32 %v437_v6, %v429_v4 }
 0x4af   :  { %1685 = vtanh.f32 %v422_v5 }
 0x4b0   :  { %1687 = vtanh.f32 %v439_v8 }
 0x4b9   :  { %v1686_v10 = vpop.eup %1685 }
 0x4ba   :  { %v1688_v11 = vpop.eup %1687  ;;  %425 = vrot.lane.b32.xlu0 %v1686_v10, %s1810_s3 }
 0x4bb   :  { %442 = vrot.lane.b32.xlu1 %v1688_v11, %s1810_s3 }
 0x52c   :  { %v426_v12 = vpop.permute.xlu0 %425 }
 0x52d   :  { %v428_v14 = vmul.f32 %v1682_v60, %v426_v12  ;;  %v443_v15 = vpop.permute.xlu1 %442 }
 0x52e   :  { %v445_v16 = vmul.f32 %v1684_v62, %v443_v15  ;;  %v671_v62 = vld [vmem:[#allocation2 + $0x10] sm:$0xf0] }
 0x52f   :  { %447 = vrot.lane.b32.xlu0 %v428_v14, %s1811_s27  ;;  %v674_v63 = vrot.slane %v671_v62, 4 }
 0x530   :  { %452 = vrot.lane.b32.xlu1 %v445_v16, %s1810_s3 }
 0x5a1   :  { %v448_v17 = vpop.permute.xlu0 %447 }
 0x5a2   :  { %450 = vst.msk [vmem:[#allocation3 + $0x4] sm:$0xf] %vm308_vm1, %v448_v17  ;;  %v453_v18 = vpop.permute.xlu1 %452 }
 0x5a3   :  { %455 = vst.msk [vmem:[#allocation3 + $0x18] sm:$0xf] %vm314_vm2, %v453_v18  ;;  %v456_v19 = vsel %vm48_vm0, %v448_v17, %v453_v18 }
 0x5a4   :  { %1442 = vmatmul.mubr.msk.f32.vlgmr.msra.gmra.mrb[2].mxu1 %vm174_vm3, %v456_v19 }
 0x5a5   :  { %1574 = vmatpush1.bf16.msra.mxu1 %v1881_v13  ;;  %804 = vmatprep.mubr.f32.mxu1 %v1809_v7 }
 0x5a6   :  { %1576 = vmatprep.subr.bf16.mxu1 %v1903_v22 }
 0x5a9   :  { %1578 = vmatpush1.bf16.msra.mxu1 %v1911_v25 }
 0x5aa   :  { %1580 = vmatprep.subr.bf16.mxu1 %v1923_v29 }
 0x5ad   :  { %1582 = vmatpush1.bf16.msra.mxu1 %v1935_v33 }
 0x5ae   :  { %1584 = vmatprep.subr.bf16.mxu1 %v1939_v34 }
 0x5b1   :  { %1586 = vmatpush1.bf16.msra.mxu1 %v1954_v38 }
 0x5b2   :  { %1604 = vmatprep.subr.bf16.mxu1 %v1870_v9 }
 0x677   :  { %v526_v21 = vpop.f32.mrb[2].mxu1 }
 0x678   :  { %v533_v26 = vadd.f32 %v531_v23, %v526_v21  ;;  %v528_v27 = vpop.f32.mrb[3].mxu1 }
 0x679   :  { %v537_v28 = vadd.f32 %v535_v24, %v528_v27 }
 0x67a   :  { %1689 = vtanh.f32 %v533_v26  ;;  %v1443_v32 = vmul.f32 -1.442695, %v533_v26 }
 0x67b   :  { %1691 = vtanh.f32 %v537_v28  ;;  %v1444_v35 = vmul.f32 -1.442695, %v537_v28 }
 0x67c   :  { %1693 = vpow2.f32 %v1443_v32 }
 0x67d   :  { %1695 = vpow2.f32 %v1444_v35 }
 0x684   :  { %v1690_v30 = vpop.eup %1689 }
 0x685   :  { %v1692_v31 = vpop.eup %1691  ;;  %554 = vrot.lane.b32.xlu0 %v1690_v30, %s1810_s3 }
 0x686   :  { %571 = vrot.lane.b32.xlu1 %v1692_v31, %s1810_s3  ;;  %v1694_v36 = vpop.eup %1693 }
 0x687   :  { %v1696_v37 = vpop.eup %1695  ;;  %v541_v39 = vadd.f32 1.0, %v1694_v36 }
 0x688   :  { %v548_v40 = vadd.f32 1.0, %v1696_v37 }
 0x689   :  { %1697 = vrcp.f32 %v541_v39 }
 0x68a   :  { %1699 = vrcp.f32 %v548_v40 }
 0x693   :  { %v1698_v41 = vpop.eup %1697 }
 0x694   :  { %v1700_v43 = vpop.eup %1699  ;;  %v552_v47 = vmul.f32 %v1698_v41, %v422_v5 }
 0x695   :  { %v569_v49 = vmul.f32 %v1700_v43, %v439_v8 }
 0x6f7   :  { %v555_v42 = vpop.permute.xlu0 %554 }
 0x6f8   :  { %v557_v44 = vmul.f32 %v1698_v41, %v555_v42  ;;  %v572_v45 = vpop.permute.xlu1 %571  ;;  %v812_v42 = vld [vmem:[#allocation2 + $0x18] sm:$0xf0] }
 0x6f9   :  { %v574_v46 = vmul.f32 %v1700_v43, %v572_v45  ;;  %v815_v45 = vrot.slane %v812_v42, 4 }
 0x6fa   :  { %559 = vrot.lane.b32.xlu0 %v557_v44, %s1811_s27  ;;  %v811_v44 = vld [vmem:[#allocation2 + $0x20] sm:$0xf] }
 0x6fb   :  { %576 = vrot.lane.b32.xlu1 %v574_v46, %s1811_s27 }
 0x76c   :  { %v560_v48 = vpop.permute.xlu0 %559 }
 0x76d   :  { %v562_v50 = vadd.f32 %v560_v48, %v552_v47  ;;  %v577_v51 = vpop.permute.xlu1 %576 }
 0x76e   :  { %v579_v52 = vadd.f32 %v577_v51, %v569_v49 }
 0x76f   :  { %1701 = vtanh.f32 %v562_v50 }
 0x770   :  { %1703 = vtanh.f32 %v579_v52 }
 0x779   :  { %v1702_v53 = vpop.eup %1701 }
 0x77a   :  { %v1704_v54 = vpop.eup %1703  ;;  %565 = vrot.lane.b32.xlu0 %v1702_v53, %s1810_s3 }
 0x77b   :  { %582 = vrot.lane.b32.xlu1 %v1704_v54, %s1810_s3 }
 0x7ec   :  { %v566_v55 = vpop.permute.xlu0 %565 }
 0x7ed   :  { %v568_v56 = vmul.f32 %v1698_v41, %v566_v55  ;;  %v583_v57 = vpop.permute.xlu1 %582 }
 0x7ee   :  { %v585_v58 = vmul.f32 %v1700_v43, %v583_v57 }
 0x7ef   :  { %587 = vrot.lane.b32.xlu0 %v568_v56, %s1811_s27 }
 0x7f0   :  { %592 = vrot.lane.b32.xlu1 %v585_v58, %s1810_s3 }
 0x861   :  { %v588_v59 = vpop.permute.xlu0 %587 }
 0x862   :  { %590 = vst.msk [vmem:[#allocation3 + $0x8] sm:$0xf] %vm308_vm1, %v588_v59  ;;  %v593_v60 = vpop.permute.xlu1 %592 }
 0x863   :  { %595 = vst.msk [vmem:[#allocation3 + $0x14] sm:$0xf] %vm314_vm2, %v593_v60  ;;  %v596_v61 = vsel %vm48_vm0, %v588_v59, %v593_v60 }
 0x864   :  { %1445 = vmatmul.mubr.msk.f32.vlgmr.msra.gmra.mrb[10].mxu0 %vm174_vm3, %v596_v61 }
 0x865   :  { %1590 = vmatpush1.bf16.msra.mxu0 %v1881_v13  ;;  %944 = vmatprep.mubr.f32.mxu0 %v1809_v7 }
 0x866   :  { %1592 = vmatprep.subr.bf16.mxu0 %v1903_v22 }
 0x869   :  { %1594 = vmatpush1.bf16.msra.mxu0 %v1911_v25 }
 0x86a   :  { %1596 = vmatprep.subr.bf16.mxu0 %v1923_v29 }
 0x86d   :  { %1598 = vmatpush1.bf16.msra.mxu0 %v1935_v33 }
 0x86e   :  { %1600 = vmatprep.subr.bf16.mxu0 %v1939_v34 }
 0x871   :  { %1602 = vmatpush1.bf16.msra.mxu0 %v1954_v38 }
 0x872   :  { %1620 = vmatprep.subr.bf16.mxu0 %v1870_v9 }
 0x937   :  { %v666_v0 = vpop.f32.mrb[10].mxu0 }
 0x938   :  { %v676_v1 = vadd.f32 %v674_v63, %v666_v0  ;;  %v668_v2 = vpop.f32.mrb[11].mxu0 }
 0x939   :  { %v677_v4 = vadd.f32 %v672_v3, %v668_v2 }
 0x93a   :  { %1705 = vtanh.f32 %v676_v1  ;;  %v1446_v8 = vmul.f32 -1.442695, %v676_v1 }
 0x93b   :  { %1707 = vtanh.f32 %v677_v4  ;;  %v1447_v10 = vmul.f32 -1.442695, %v677_v4 }
 0x93c   :  { %1709 = vpow2.f32 %v1446_v8 }
 0x93d   :  { %1711 = vpow2.f32 %v1447_v10 }
 0x944   :  { %v1706_v5 = vpop.eup %1705 }
 0x945   :  { %v1708_v6 = vpop.eup %1707  ;;  %694 = vrot.lane.b32.xlu0 %v1706_v5, %s1810_s3 }
 0x946   :  { %711 = vrot.lane.b32.xlu1 %v1708_v6, %s1810_s3  ;;  %v1710_v9 = vpop.eup %1709 }
 0x947   :  { %v1712_v11 = vpop.eup %1711  ;;  %v681_v12 = vadd.f32 1.0, %v1710_v9 }
 0x948   :  { %v688_v14 = vadd.f32 1.0, %v1712_v11 }
 0x949   :  { %1713 = vrcp.f32 %v681_v12 }
 0x94a   :  { %1715 = vrcp.f32 %v688_v14 }
 0x953   :  { %v1714_v15 = vpop.eup %1713 }
 0x954   :  { %v1716_v17 = vpop.eup %1715  ;;  %v692_v21 = vmul.f32 %v1714_v15, %v562_v50 }
 0x955   :  { %v709_v24 = vmul.f32 %v1716_v17, %v579_v52 }
 0x9b7   :  { %v695_v16 = vpop.permute.xlu0 %694 }
 0x9b8   :  { %v697_v18 = vmul.f32 %v1714_v15, %v695_v16  ;;  %v712_v19 = vpop.permute.xlu1 %711  ;;  %v951_v16 = vld [vmem:[#allocation2 + $0x20] sm:$0xf0] }
 0x9b9   :  { %v714_v20 = vmul.f32 %v1716_v17, %v712_v19 }
 0x9ba   :  { %699 = vrot.lane.b32.xlu0 %v697_v18, %s1811_s27 }
 0x9bb   :  { %716 = vrot.lane.b32.xlu1 %v714_v20, %s1811_s27 }
 0xa2c   :  { %v700_v23 = vpop.permute.xlu0 %699 }
 0xa2d   :  { %v702_v26 = vadd.f32 %v700_v23, %v692_v21  ;;  %v717_v27 = vpop.permute.xlu1 %716 }
 0xa2e   :  { %v719_v28 = vadd.f32 %v717_v27, %v709_v24 }
 0xa2f   :  { %1717 = vtanh.f32 %v702_v26 }
 0xa30   :  { %1719 = vtanh.f32 %v719_v28 }
 0xa39   :  { %v1718_v30 = vpop.eup %1717 }
 0xa3a   :  { %v1720_v31 = vpop.eup %1719  ;;  %705 = vrot.lane.b32.xlu0 %v1718_v30, %s1810_s3 }
 0xa3b   :  { %722 = vrot.lane.b32.xlu1 %v1720_v31, %s1810_s3 }
 0xaac   :  { %v706_v32 = vpop.permute.xlu0 %705 }
 0xaad   :  { %v708_v35 = vmul.f32 %v1714_v15, %v706_v32  ;;  %v723_v36 = vpop.permute.xlu1 %722 }
 0xaae   :  { %v725_v37 = vmul.f32 %v1716_v17, %v723_v36  ;;  %v954_v17 = vrot.slane %v951_v16, 4 }
 0xaaf   :  { %727 = vrot.lane.b32.xlu0 %v708_v35, %s1811_s27 }
 0xab0   :  { %732 = vrot.lane.b32.xlu1 %v725_v37, %s1810_s3 }
 0xb21   :  { %v728_v39 = vpop.permute.xlu0 %727 }
 0xb22   :  { %730 = vst.msk [vmem:[#allocation3 + $0xc] sm:$0xf] %vm308_vm1, %v728_v39  ;;  %v733_v40 = vpop.permute.xlu1 %732 }
 0xb23   :  { %735 = vst.msk [vmem:[#allocation3 + $0x10] sm:$0xf] %vm314_vm2, %v733_v40  ;;  %v736_v41 = vsel %vm48_vm0, %v728_v39, %v733_v40 }
 0xb24   :  { %1448 = vmatmul.mubr.msk.f32.vlgmr.msra.gmra.mrb[4].mxu1 %vm174_vm3, %v736_v41 }
 0xb25   :  { %1606 = vmatpush1.bf16.msra.mxu1 %v1881_v13  ;;  %1084 = vmatprep.mubr.f32.mxu1 %v1809_v7 }
 0xb26   :  { %1608 = vmatprep.subr.bf16.mxu1 %v1903_v22 }
 0xb29   :  { %1610 = vmatpush1.bf16.msra.mxu1 %v1911_v25 }
 0xb2a   :  { %1612 = vmatprep.subr.bf16.mxu1 %v1923_v29 }
 0xb2d   :  { %1614 = vmatpush1.bf16.msra.mxu1 %v1935_v33 }
 0xb2e   :  { %1616 = vmatprep.subr.bf16.mxu1 %v1939_v34 }
 0xb31   :  { %1618 = vmatpush1.bf16.msra.mxu1 %v1954_v38 }
 0xbf7   :  { %v806_v43 = vpop.f32.mrb[4].mxu1 }
 0xbf8   :  { %v813_v46 = vadd.f32 %v811_v44, %v806_v43  ;;  %v808_v47 = vpop.f32.mrb[5].mxu1 }
 0xbf9   :  { %v817_v48 = vadd.f32 %v815_v45, %v808_v47 }
 0xbfa   :  { %1721 = vtanh.f32 %v813_v46  ;;  %v1449_v51 = vmul.f32 -1.442695, %v813_v46 }
 0xbfb   :  { %1723 = vtanh.f32 %v817_v48  ;;  %v1450_v52 = vmul.f32 -1.442695, %v817_v48 }
 0xbfc   :  { %1725 = vpow2.f32 %v1449_v51 }
 0xbfd   :  { %1727 = vpow2.f32 %v1450_v52  ;;  %v1091_v52 = vld [vmem:[#allocation2 + $0x30] sm:$0xf] }
 0xc04   :  { %v1722_v49 = vpop.eup %1721 }
 0xc05   :  { %v1724_v50 = vpop.eup %1723  ;;  %834 = vrot.lane.b32.xlu0 %v1722_v49, %s1810_s3 }
 0xc06   :  { %851 = vrot.lane.b32.xlu1 %v1724_v50, %s1810_s3  ;;  %v1726_v53 = vpop.eup %1725  ;;  %v1092_v50 = vld [vmem:[#allocation2 + $0x8] sm:$0xf0] }
 0xc07   :  { %v1728_v54 = vpop.eup %1727  ;;  %v821_v55 = vadd.f32 1.0, %v1726_v53  ;;  %v1095_v53 = vrot.slane %v1092_v50, 4  ;;  %v1301_v50 = vld [vmem:[%s2179_s4 + $0x8] sm:$0xff] }
 0xc08   :  { %v828_v56 = vadd.f32 1.0, %v1728_v54 }
 0xc09   :  { %1729 = vrcp.f32 %v821_v55 }
 0xc0a   :  { %1731 = vrcp.f32 %v828_v56 }
 0xc13   :  { %v1730_v57 = vpop.eup %1729 }
 0xc14   :  { %v1732_v59 = vpop.eup %1731  ;;  %v832_v63 = vmul.f32 %v1730_v57, %v702_v26 }
 0xc15   :  { %v849_v1 = vmul.f32 %v1732_v59, %v719_v28 }
 0xc77   :  { %v835_v58 = vpop.permute.xlu0 %834 }
 0xc78   :  { %v837_v60 = vmul.f32 %v1730_v57, %v835_v58  ;;  %v852_v61 = vpop.permute.xlu1 %851 }
 0xc79   :  { %v854_v62 = vmul.f32 %v1732_v59, %v852_v61 }
 0xc7a   :  { %839 = vrot.lane.b32.xlu0 %v837_v60, %s1811_s27 }
 0xc7b   :  { %856 = vrot.lane.b32.xlu1 %v854_v62, %s1811_s27 }
 0xcec   :  { %v840_v0 = vpop.permute.xlu0 %839 }
 0xced   :  { %v842_v2 = vadd.f32 %v840_v0, %v832_v63  ;;  %v857_v3 = vpop.permute.xlu1 %856 }
 0xcee   :  { %v859_v4 = vadd.f32 %v857_v3, %v849_v1 }
 0xcef   :  { %1733 = vtanh.f32 %v842_v2 }
 0xcf0   :  { %1735 = vtanh.f32 %v859_v4 }
 0xcf9   :  { %v1734_v5 = vpop.eup %1733 }
 0xcfa   :  { %v1736_v6 = vpop.eup %1735  ;;  %845 = vrot.lane.b32.xlu0 %v1734_v5, %s1810_s3 }
 0xcfb   :  { %862 = vrot.lane.b32.xlu1 %v1736_v6, %s1810_s3 }
 0xd6c   :  { %v846_v8 = vpop.permute.xlu0 %845 }
 0xd6d   :  { %v848_v10 = vmul.f32 %v1730_v57, %v846_v8  ;;  %v863_v9 = vpop.permute.xlu1 %862 }
 0xd6e   :  { %v865_v11 = vmul.f32 %v1732_v59, %v863_v9 }
 0xd6f   :  { %867 = vrot.lane.b32.xlu0 %v848_v10, %s1811_s27 }
 0xd70   :  { %872 = vrot.lane.b32.xlu1 %v865_v11, %s1810_s3 }
 0xde1   :  { %v868_v12 = vpop.permute.xlu0 %867 }
 0xde2   :  { %870 = vst.msk [vmem:[#allocation3 + $0x10] sm:$0xf] %vm308_vm1, %v868_v12  ;;  %v873_v14 = vpop.permute.xlu1 %872 }
 0xde3   :  { %875 = vst.msk [vmem:[#allocation3 + $0xc] sm:$0xf] %vm314_vm2, %v873_v14  ;;  %v876_v15 = vsel %vm48_vm0, %v868_v12, %v873_v14 }
 0xde4   :  { %1451 = vmatmul.mubr.msk.f32.vlgmr.msra.gmra.mrb[12].mxu0 %vm174_vm3, %v876_v15 }
 0xde5   :  { %1622 = vmatpush1.bf16.msra.mxu0 %v1881_v13  ;;  %1224 = vmatprep.mubr.f32.mxu0 %v1809_v7  ;;  %v952_v13 = vld [vmem:[#allocation2 + $0x18] sm:$0xf] }
 0xde6   :  { %1624 = vmatprep.subr.bf16.mxu0 %v1903_v22 }
 0xde9   :  { %1626 = vmatpush1.bf16.msra.mxu0 %v1911_v25 }
 0xdea   :  { %1628 = vmatprep.subr.bf16.mxu0 %v1923_v29 }
 0xded   :  { %1630 = vmatpush1.bf16.msra.mxu0 %v1935_v33 }
 0xdee   :  { %1632 = vmatprep.subr.bf16.mxu0 %v1939_v34 }
 0xdf1   :  { %1634 = vmatpush1.bf16.msra.mxu0 %v1954_v38 }
 0xeb7   :  { %v946_v18 = vpop.f32.mrb[12].mxu0 }
 0xeb8   :  { %v956_v19 = vadd.f32 %v954_v17, %v946_v18  ;;  %v948_v20 = vpop.f32.mrb[13].mxu0 }
 0xeb9   :  { %v957_v21 = vadd.f32 %v952_v13, %v948_v20 }
 0xeba   :  { %1737 = vtanh.f32 %v956_v19  ;;  %v1452_v25 = vmul.f32 -1.442695, %v956_v19 }
 0xebb   :  { %1739 = vtanh.f32 %v957_v21  ;;  %v1453_v29 = vmul.f32 -1.442695, %v957_v21 }
 0xebc   :  { %1741 = vpow2.f32 %v1452_v25 }
 0xebd   :  { %1743 = vpow2.f32 %v1453_v29 }
 0xec4   :  { %v1738_v7 = vpop.eup %1737 }
 0xec5   :  { %v1740_v22 = vpop.eup %1739  ;;  %974 = vrot.lane.b32.xlu0 %v1738_v7, %s1810_s3 }
 0xec6   :  { %991 = vrot.lane.b32.xlu1 %v1740_v22, %s1810_s3  ;;  %v1742_v33 = vpop.eup %1741  ;;  %v1231_v22 = vld [vmem:[#allocation2 + $0x30] sm:$0xf0] }
 0xec7   :  { %v1744_v34 = vpop.eup %1743  ;;  %v961_v38 = vadd.f32 1.0, %v1742_v33  ;;  %v1234_v25 = vrot.slane %v1231_v22, 4 }
 0xec8   :  { %v968_v23 = vadd.f32 1.0, %v1744_v34 }
 0xec9   :  { %1745 = vrcp.f32 %v961_v38  ;;  %v1232_v38 = vld [vmem:[#allocation2 + $0x8] sm:$0xf] }
 0xeca   :  { %1747 = vrcp.f32 %v968_v23 }
 0xed3   :  { %v1746_v24 = vpop.eup %1745 }
 0xed4   :  { %v1748_v27 = vpop.eup %1747  ;;  %v972_v32 = vmul.f32 %v1746_v24, %v842_v2 }
 0xed5   :  { %v989_v36 = vmul.f32 %v1748_v27, %v859_v4 }
 0xf37   :  { %v975_v26 = vpop.permute.xlu0 %974 }
 0xf38   :  { %v977_v28 = vmul.f32 %v1746_v24, %v975_v26  ;;  %v992_v30 = vpop.permute.xlu1 %991 }
 0xf39   :  { %v994_v31 = vmul.f32 %v1748_v27, %v992_v30 }
 0xf3a   :  { %979 = vrot.lane.b32.xlu0 %v977_v28, %s1811_s27 }
 0xf3b   :  { %996 = vrot.lane.b32.xlu1 %v994_v31, %s1811_s27 }
 0xfac   :  { %v980_v35 = vpop.permute.xlu0 %979 }
 0xfad   :  { %v982_v37 = vadd.f32 %v980_v35, %v972_v32  ;;  %v997_v39 = vpop.permute.xlu1 %996 }
 0xfae   :  { %v999_v40 = vadd.f32 %v997_v39, %v989_v36 }
 0xfaf   :  { %1749 = vtanh.f32 %v982_v37 }
 0xfb0   :  { %1751 = vtanh.f32 %v999_v40 }
 0xfb9   :  { %v1750_v41 = vpop.eup %1749 }
 0xfba   :  { %v1752_v42 = vpop.eup %1751  ;;  %985 = vrot.lane.b32.xlu0 %v1750_v41, %s1810_s3 }
 0xfbb   :  { %1002 = vrot.lane.b32.xlu1 %v1752_v42, %s1810_s3 }
0x102c   :  { %v986_v43 = vpop.permute.xlu0 %985 }
0x102d   :  { %v988_v44 = vmul.f32 %v1746_v24, %v986_v43  ;;  %v1003_v45 = vpop.permute.xlu1 %1002 }
0x102e   :  { %v1005_v46 = vmul.f32 %v1748_v27, %v1003_v45 }
0x102f   :  { %1007 = vrot.lane.b32.xlu0 %v988_v44, %s1811_s27 }
0x1030   :  { %1012 = vrot.lane.b32.xlu1 %v1005_v46, %s1810_s3 }
0x10a1   :  { %v1008_v47 = vpop.permute.xlu0 %1007 }
0x10a2   :  { %1010 = vst.msk [vmem:[#allocation3 + $0x14] sm:$0xf] %vm308_vm1, %v1008_v47  ;;  %v1013_v48 = vpop.permute.xlu1 %1012 }
0x10a3   :  { %1015 = vst.msk [vmem:[#allocation3 + $0x8] sm:$0xf] %vm314_vm2, %v1013_v48  ;;  %v1016_v49 = vsel %vm48_vm0, %v1008_v47, %v1013_v48 }
0x10a4   :  { %1454 = vmatmul.mubr.msk.f32.vlgmr.msra.gmra.mrb[6].mxu1 %vm174_vm3, %v1016_v49  ;;  %v1300_v49 = vld [vmem:[%s2179_s4] sm:$0xff] }
0x1177   :  { %v1086_v51 = vpop.f32.mrb[6].mxu1 }
0x1178   :  { %v1093_v54 = vadd.f32 %v1091_v52, %v1086_v51  ;;  %v1088_v55 = vpop.f32.mrb[7].mxu1  ;;  %v1302_v51 = vld [vmem:[%s2179_s4 + $0x10] sm:$0xff]  ;;  %v1635_v52 = vpack.c.bf16 %v1301_v50, %v1300_v49 }
0x1179   :  { %v1097_v56 = vadd.f32 %v1095_v53, %v1088_v55  ;;  %v1303_v53 = vld [vmem:[%s2179_s4 + $0x18] sm:$0xff] }
0x117a   :  { %1753 = vtanh.f32 %v1093_v54  ;;  %v1455_v59 = vmul.f32 -1.442695, %v1093_v54  ;;  %v1639_v54 = vpack.c.bf16 %v1303_v53, %v1302_v51  ;;  %1636 = vmatprep.subr.bf16.mxu1 %v1635_v52 }
0x117b   :  { %1755 = vtanh.f32 %v1097_v56  ;;  %v1456_v60 = vmul.f32 -1.442695, %v1097_v56  ;;  %1638 = vmatpush3.bf16.msra.mxu1 %v1635_v52 }
0x117c   :  { %1757 = vpow2.f32 %v1455_v59  ;;  %1640 = vmatprep.subr.bf16.mxu1 %v1639_v54 }
0x117d   :  { %1759 = vpow2.f32 %v1456_v60  ;;  %v1306_v60 = vld [vmem:[%s2179_s4 + $0x30] sm:$0xff] }
0x117f   :  { %1642 = vmatpush3.bf16.msra.mxu1 %v1639_v54 }
0x1184   :  { %v1754_v57 = vpop.eup %1753 }
0x1185   :  { %v1756_v58 = vpop.eup %1755  ;;  %1114 = vrot.lane.b32.xlu0 %v1754_v57, %s1810_s3  ;;  %v1304_v57 = vld [vmem:[%s2179_s4 + $0x20] sm:$0xff] }
0x1186   :  { %1131 = vrot.lane.b32.xlu1 %v1756_v58, %s1810_s3  ;;  %v1758_v61 = vpop.eup %1757  ;;  %v1305_v58 = vld [vmem:[%s2179_s4 + $0x28] sm:$0xff] }
0x1187   :  { %v1760_v62 = vpop.eup %1759  ;;  %v1101_v63 = vadd.f32 1.0, %v1758_v61  ;;  %v1643_v59 = vpack.c.bf16 %v1305_v58, %v1304_v57  ;;  %v1307_v61 = vld [vmem:[%s2179_s4 + $0x38] sm:$0xff] }
0x1188   :  { %v1108_v0 = vadd.f32 1.0, %v1760_v62  ;;  %v1647_v62 = vpack.c.bf16 %v1307_v61, %v1306_v60 }
0x1189   :  { %1761 = vrcp.f32 %v1101_v63  ;;  %1644 = vmatprep.subr.bf16.mxu1 %v1643_v59 }
0x118a   :  { %1763 = vrcp.f32 %v1108_v0  ;;  %1646 = vmatpush3.bf16.msra.mxu1 %v1643_v59 }
0x118b   :  { %1648 = vmatprep.subr.bf16.mxu1 %v1647_v62 }
0x118e   :  { %1650 = vmatpush3.bf16.msra.mxu1 %v1647_v62 }
0x1193   :  { %v1762_v1 = vpop.eup %1761 }
0x1194   :  { %v1764_v3 = vpop.eup %1763  ;;  %v1112_v8 = vmul.f32 %v1762_v1, %v982_v37 }
0x1195   :  { %v1129_v9 = vmul.f32 %v1764_v3, %v999_v40 }
0x11f7   :  { %v1115_v2 = vpop.permute.xlu0 %1114 }
0x11f8   :  { %v1117_v4 = vmul.f32 %v1762_v1, %v1115_v2  ;;  %v1132_v5 = vpop.permute.xlu1 %1131 }
0x11f9   :  { %v1134_v6 = vmul.f32 %v1764_v3, %v1132_v5 }
0x11fa   :  { %1119 = vrot.lane.b32.xlu0 %v1117_v4, %s1811_s27 }
0x11fb   :  { %1136 = vrot.lane.b32.xlu1 %v1134_v6, %s1811_s27  ;;  %v1297_v6 = vld [vmem:[#allocation3 + $0x8] sm:$0xff] }
0x126c   :  { %v1120_v10 = vpop.permute.xlu0 %1119 }
0x126d   :  { %v1122_v11 = vadd.f32 %v1120_v10, %v1112_v8  ;;  %v1137_v12 = vpop.permute.xlu1 %1136  ;;  %v1298_v8 = vld [vmem:[#allocation3 + $0x10] sm:$0xff] }
0x126e   :  { %v1139_v14 = vadd.f32 %v1137_v12, %v1129_v9  ;;  %v1460_v9 = vld [vmem:[%s2180_s5] ss:$0 sm:$0xff] }
0x126f   :  { %1765 = vtanh.f32 %v1122_v11 }
0x1270   :  { %1767 = vtanh.f32 %v1139_v14 }
0x1279   :  { %v1766_v15 = vpop.eup %1765 }
0x127a   :  { %v1768_v16 = vpop.eup %1767  ;;  %1125 = vrot.lane.b32.xlu0 %v1766_v15, %s1810_s3 }
0x127b   :  { %1142 = vrot.lane.b32.xlu1 %v1768_v16, %s1810_s3 }
0x12ec   :  { %v1126_v17 = vpop.permute.xlu0 %1125 }
0x12ed   :  { %v1128_v18 = vmul.f32 %v1762_v1, %v1126_v17  ;;  %v1143_v19 = vpop.permute.xlu1 %1142 }
0x12ee   :  { %v1145_v20 = vmul.f32 %v1764_v3, %v1143_v19 }
0x12ef   :  { %1147 = vrot.lane.b32.xlu0 %v1128_v18, %s1811_s27 }
0x12f0   :  { %1152 = vrot.lane.b32.xlu1 %v1145_v20, %s1810_s3 }
0x1361   :  { %v1148_v13 = vpop.permute.xlu0 %1147 }
0x1362   :  { %1150 = vst.msk [vmem:[#allocation3 + $0x18] sm:$0xf] %vm308_vm1, %v1148_v13  ;;  %v1153_v21 = vpop.permute.xlu1 %1152 }
0x1363   :  { %1155 = vst.msk [vmem:[#allocation3 + $0x4] sm:$0xf] %vm314_vm2, %v1153_v21  ;;  %v1156_v7 = vsel %vm48_vm0, %v1148_v13, %v1153_v21 }
0x1364   :  { %1457 = vmatmul.mubr.msk.f32.vlgmr.msra.gmra.mrb[14].mxu0 %vm174_vm3, %v1156_v7 }
0x1437   :  { %v1226_v29 = vpop.f32.mrb[14].mxu0 }
0x1438   :  { %v1236_v33 = vadd.f32 %v1234_v25, %v1226_v29  ;;  %v1228_v34 = vpop.f32.mrb[15].mxu0 }
0x1439   :  { %v1237_v23 = vadd.f32 %v1232_v38, %v1228_v34 }
0x143a   :  { %1769 = vtanh.f32 %v1236_v33  ;;  %v1458_v27 = vmul.f32 -1.442695, %v1236_v33 }
0x143b   :  { %1771 = vtanh.f32 %v1237_v23  ;;  %v1459_v28 = vmul.f32 -1.442695, %v1237_v23 }
0x143c   :  { %1773 = vpow2.f32 %v1458_v27 }
0x143d   :  { %1775 = vpow2.f32 %v1459_v28 }
0x1444   :  { %v1770_v24 = vpop.eup %1769 }
0x1445   :  { %v1772_v26 = vpop.eup %1771  ;;  %1254 = vrot.lane.b32.xlu1 %v1770_v24, %s1810_s3 }
0x1446   :  { %1271 = vrot.lane.b32.xlu0 %v1772_v26, %s1810_s3  ;;  %v1774_v30 = vpop.eup %1773 }
0x1447   :  { %v1776_v31 = vpop.eup %1775  ;;  %v1241_v32 = vadd.f32 1.0, %v1774_v30 }
0x1448   :  { %v1248_v35 = vadd.f32 1.0, %v1776_v31 }
0x1449   :  { %1777 = vrcp.f32 %v1241_v32 }
0x144a   :  { %1779 = vrcp.f32 %v1248_v35 }
0x1453   :  { %v1778_v36 = vpop.eup %1777 }
0x1454   :  { %v1780_v39 = vpop.eup %1779  ;;  %v1252_v43 = vmul.f32 %v1778_v36, %v1122_v11 }
0x1455   :  { %v1269_v45 = vmul.f32 %v1780_v39, %v1139_v14 }
0x14b7   :  { %v1255_v37 = vpop.permute.xlu1 %1254 }
0x14b8   :  { %v1257_v40 = vmul.f32 %v1778_v36, %v1255_v37  ;;  %v1272_v41 = vpop.permute.xlu0 %1271 }
0x14b9   :  { %v1274_v42 = vmul.f32 %v1780_v39, %v1272_v41 }
0x14ba   :  { %1259 = vrot.lane.b32.xlu1 %v1257_v40, %s1811_s27 }
0x14bb   :  { %1276 = vrot.lane.b32.xlu0 %v1274_v42, %s1811_s27 }
0x152c   :  { %v1260_v44 = vpop.permute.xlu1 %1259 }
0x152d   :  { %v1262_v46 = vadd.f32 %v1260_v44, %v1252_v43  ;;  %v1277_v47 = vpop.permute.xlu0 %1276 }
0x152e   :  { %v1279_v48 = vadd.f32 %v1277_v47, %v1269_v45 }
0x152f   :  { %1781 = vtanh.f32 %v1262_v46 }
0x1530   :  { %1783 = vtanh.f32 %v1279_v48 }
0x1539   :  { %v1782_v55 = vpop.eup %1781 }
0x153a   :  { %v1784_v56 = vpop.eup %1783  ;;  %1265 = vrot.lane.b32.xlu1 %v1782_v55, %s1810_s3 }
0x153b   :  { %1282 = vrot.lane.b32.xlu0 %v1784_v56, %s1810_s3 }
0x15ac   :  { %v1266_v63 = vpop.permute.xlu1 %1265 }
0x15ad   :  { %v1268_v0 = vmul.f32 %v1778_v36, %v1266_v63  ;;  %v1283_v1 = vpop.permute.xlu0 %1282 }
0x15ae   :  { %v1285_v2 = vmul.f32 %v1780_v39, %v1283_v1 }
0x15af   :  { %1287 = vrot.lane.b32.xlu1 %v1268_v0, %s1811_s27 }
0x15b0   :  { %1292 = vrot.lane.b32.xlu0 %v1285_v2, %s1810_s3 }
0x1621   :  { %v1288_v3 = vpop.permute.xlu1 %1287 }
0x1622   :  { %1290 = vst.msk [vmem:[#allocation3 + $0x1c] sm:$0xf] %vm308_vm1, %v1288_v3  ;;  %v1293_v4 = vpop.permute.xlu0 %1292 }
0x1623   :  { %1295 = vst.msk [vmem:[#allocation3] sm:$0xf] %vm314_vm2, %v1293_v4 }
0x1629   :  { %v1299_v10 = vld [vmem:[#allocation3 + $0x18] sm:$0xff] }
0x162a   :  { %v1296_v5 = vld [vmem:[#allocation3] sm:$0xff] }
0x162b   :  { %1493 = vmatprep.mubr.msk.f32.mxu1 %vm174_vm3, %v1296_v5 }
0x162c   :  { %1494 = vmatmul.mubr.msk.f32.vlgmr.msra.gmra.mrb[8].mxu1 %vm174_vm3, %v1297_v6 }
0x162d   :  { %1496 = vmatprep.mubr.msk.f32.mxu1 %vm174_vm3, %v1298_v8 }
0x1630   :  { %1497 = vmatmul.mubr.msk.f32.gmra.mrb[10].mxu1 %vm174_vm3, %v1299_v10 }
0x16ff   :  { %v1495_v11 = vpop.f32.mrb[8].mxu1 }
0x1700   :  { %v1399_v12 = vadd.f32 %v1495_v11, %v1460_v9  ;;  %v1393_v14 = vpop.f32.mrb[9].mxu1 }
0x1701   :  { %v1394_v15 = vadd.f32 %v1460_v9, %v1393_v14 }
0x1702   :  { %1414 = vst.msk [vmem:[#allocation4 + $0x8] sm:$0xff] %vm1412_vm4, %v1399_v12 }
0x1703   :  { %1413 = vst.msk [vmem:[#allocation4] sm:$0xff] %vm1412_vm4, %v1394_v15  ;;  %v1498_v16 = vpop.f32.mrb[10].mxu1 }
0x1704   :  { %v1409_v17 = vadd.f32 %v1498_v16, %v1460_v9  ;;  %v1403_v18 = vpop.f32.mrb[11].mxu1 }
0x1705   :  { %v1404_v19 = vadd.f32 %v1460_v9, %v1403_v18 }
0x1706   :  { %1416 = vst.msk [vmem:[#allocation4 + $0x18] sm:$0xff] %vm1412_vm4, %v1409_v17 }
0x1707   :  { %1415 = vst.msk [vmem:[#allocation4 + $0x10] sm:$0xff] %vm1412_vm4, %v1404_v19 }
0x1708   :  { %1796 = shalt.err (!%p1793_p4)
}
0x1709   :  { %s1797_s24 = scalar_lea.hbm %s2181_s6, 512 }
0x170a   :  { %p1798_p5 = scmp.ne.s32.totalorder %s2181_s6, %s1797_s24  ;;  %p1801_p6 = scmp.lt.u32.totalorder %s1797_s24, %s2181_s6 }
0x170c   :  { %p1803_p7 = pnand %p1801_p6, %p1798_p5 }
0x170e   :  { %1806 = shalt.err (!%p1803_p7)
}
0x170f   :  { %s1813_s3 = smov 128   ;;  %s1814_s27 = smov 8  }
0x1710   :  { %1428 = dma.vmem_to_hbm [thread:$0]  %s1423_s22, 512, %s2181_s6, [#allocation5], %s1813_s3, %s1813_s3, %s1814_s27  }
0x1711   :  { %1807 = dma.done.wait [#allocation5], 512  }
0x1712   :  { %1808 = vsyncadd [#allocation5], 4294966784 }
0x1713   :  { %1432 = vsyncpa [#allocation5], 1 }

</bundles_post_ra>
